<compile_context>
chip_gen: v7x
topology: tpu7x:2x2x1
jax: 0.10.0
libtpu: 0.0.40
codegen_flags: <defaults>
</compile_context>

<pallas_src>
import functools

import jax
import jax.numpy as jnp
from jax.experimental import pallas as pl
from jax.experimental.pallas import tpu as pltpu

f32 = jnp.float32
bf16 = jnp.bfloat16


def _round_up(v, m):
    return (v + m - 1) // m * m


def spmotif_kernel(n_layers, num_tiles, tile_n, n_pad, h_pad, aw_resident,
                   x_ref, aw_ref, degw_ref, pool_ref,
                   w_emb_ref, b_emb_ref,
                   w1_ref, w23_ref, b1_ref, b3_ref,
                   wf1_ref, bf1_ref, wf2_ref, bf2_ref,
                   out_ref, h_scr):
    p = pl.program_id(0)   # phase: 0 = node embedding, 1..n_layers = LEConv + ReLU
    t = pl.program_id(1)   # node-row tile

    # h double-buffer parity: phase p writes buffer (p % 2), reads ((p-1) % 2).
    wp = p % 2
    rp = (p + 1) % 2
    woff = pl.multiple_of(wp * n_pad + t * tile_n, tile_n)
    roff_full = pl.multiple_of(rp * n_pad, tile_n)
    roff_rows = pl.multiple_of(rp * n_pad + t * tile_n, tile_n)

    @pl.when((p == 0) & (t == 0))
    def _init_out():
        out_ref[...] = jnp.zeros_like(out_ref)

    # ---- phase 0: node embedding for this tile of node rows -------------------
    @pl.when(p == 0)
    def _embed():
        emb = jnp.dot(x_ref[...], w_emb_ref[...], preferred_element_type=f32)
        h_scr[pl.ds(woff, tile_n), :] = (emb + b_emb_ref[...]).astype(h_scr.dtype)

    # ---- phases 1..n_layers: LEConv + ReLU for this tile of node rows ---------
    @pl.when(p > 0)
    def _leconv():
        h_full = h_scr[pl.ds(roff_full, n_pad), :]        # [n_pad, h_pad]  bf16
        h_rows = h_scr[pl.ds(roff_rows, tile_n), :]       # [tile_n, h_pad] bf16

        if aw_resident:
            aw_rows = aw_ref[pl.ds(pl.multiple_of(t * tile_n, tile_n), tile_n), :]
        else:
            aw_rows = aw_ref[...]                          # streamed row block

        # Neighbor term: (Aw[rows,:] @ h) @ W1   (== Aw[rows,:] @ (h @ W1))
        nb = jnp.dot(aw_rows, h_full, preferred_element_type=f32)
        agg = jnp.dot(nb.astype(bf16), w1_ref[0], preferred_element_type=f32)

        # Self terms: fused h[rows] @ [W2 | W3]  (lane-dense 2*h_pad output)
        s = jnp.dot(h_rows, w23_ref[0], preferred_element_type=f32)
        s2 = s[:, :h_pad]                                  # h @ W2
        s3 = s[:, h_pad:]                                  # h @ W3

        dg = degw_ref[...]                                 # [tile_n, 1] weighted in-degree
        h_new = agg + dg * (b1_ref[0] - s2) + s3 + b3_ref[0]
        h_scr[pl.ds(woff, tile_n), :] = jnp.maximum(h_new, 0.0).astype(h_scr.dtype)

    # ---- final step: global mean pool + fc_out ---------------------------------
    @pl.when((p == n_layers) & (t == num_tiles - 1))
    def _pool_and_fc():
        final_off = (n_layers % 2) * n_pad                 # static
        h_final = h_scr[pl.ds(final_off, n_pad), :]        # [n_pad, h_pad] bf16
        g = jnp.dot(pool_ref[...], h_final, preferred_element_type=f32)   # [g_pad, h_pad]
        z = jnp.dot(g, wf1_ref[...], preferred_element_type=f32) + bf1_ref[...]
        z = jnp.maximum(z, 0.0)
        out_ref[...] = jnp.dot(z, wf2_ref[...], preferred_element_type=f32) + bf2_ref[...]


def spmotif_forward(x, edge_index, batch, edge_attr, params, *,
                    n_layers, num_graphs, num_class, tile_n=128,
                    force_stream=False):
    N, x_dim = x.shape
    E = edge_index.shape[1]
    hidden = params['w_emb'].shape[1]

    n_pad = _round_up(N, tile_n)
    x_pad = _round_up(x_dim, 128)
    h_pad = _round_up(hidden, 128)
    f1_pad = _round_up(2 * hidden, 128)
    c_pad = _round_up(num_class, 128)
    g_pad = _round_up(num_graphs, 8)
    num_tiles = n_pad // tile_n

    src, dst = edge_index[0], edge_index[1]
    ew = edge_attr.reshape(E).astype(f32)

    # Weighted adjacency: Aw[i, j] = sum of edge weights of edges j -> i,
    # weighted in-degree degw[i] = sum_{e: dst==i} w_e. Exact replacement for
    # the one-hot gather/scatter formulation.
    aw = jnp.zeros((n_pad, n_pad), f32).at[dst, src].add(ew)
    degw = aw.sum(axis=1, keepdims=True)                           # [n_pad, 1] f32
    aw_b = aw.astype(bf16)

    # Mean-pool operator (rows already hold 1/|graph|); padded graph rows are 0.
    pool = jnp.zeros((g_pad, n_pad), f32).at[batch, jnp.arange(N)].add(1.0)
    pool = (pool / jnp.maximum(pool.sum(axis=1, keepdims=True), 1.0)).astype(bf16)

    def pad2(a, r, c):
        return jnp.pad(a, ((0, r - a.shape[0]), (0, c - a.shape[1])))

    # bf16 for heavy MXU operands, f32 biases / FC-head weights.
    x_p = pad2(x.astype(f32), n_pad, x_pad).astype(bf16)

    w_emb = pad2(params['w_emb'], x_pad, h_pad).astype(bf16)
    b_emb = pad2(params['b_emb'].reshape(1, -1), 1, h_pad)

    w1 = jnp.stack([pad2(params['w1'][l], h_pad, h_pad)
                    for l in range(n_layers)]).astype(bf16)
    w23 = jnp.stack([jnp.concatenate([pad2(params['w2'][l], h_pad, h_pad),
                                      pad2(params['w3'][l], h_pad, h_pad)], axis=1)
                     for l in range(n_layers)]).astype(bf16)
    b1 = jnp.stack([pad2(params['b1'][l].reshape(1, -1), 1, h_pad)
                    for l in range(n_layers)])
    b3 = jnp.stack([pad2(params['b3'][l].reshape(1, -1), 1, h_pad)
                    for l in range(n_layers)])

    wf1 = pad2(params['wf1'], h_pad, f1_pad)
    bf1 = pad2(params['bf1'].reshape(1, -1), 1, f1_pad)
    wf2 = pad2(params['wf2'], f1_pad, c_pad)
    bf2 = pad2(params['bf2'].reshape(1, -1), 1, c_pad)

    # Keep Aw fully VMEM-resident (fetched once) when it conservatively fits a
    # ~20 MiB budget even if the pipeline double-buffers it; otherwise stream
    # row blocks per layer.
    aw_resident = (not force_stream) and (2 * n_pad * n_pad * 2 <= 20 * 2**20)

    def full(shape):
        return pl.BlockSpec(shape, lambda p, t, _s=shape: (0,) * len(_s))

    def layer_idx(p, t):
        return (jnp.maximum(p - 1, 0), 0, 0)

    # x is only needed in phase 0; freeze its block index afterwards so the
    # pipeline does not keep re-streaming it during the LEConv phases.
    def x_map(p, t):
        return (t * (1 - jnp.minimum(p, 1)), 0)

    if aw_resident:
        aw_spec = pl.BlockSpec((n_pad, n_pad), lambda p, t: (0, 0))
    else:
        # Row-block streaming; Aw is unused during phase 0 (embedding), so pin
        # its block index there and skip a full wasted pass over Aw.
        aw_spec = pl.BlockSpec((tile_n, n_pad),
                               lambda p, t: (t * jnp.minimum(p, 1), 0))

    grid = (n_layers + 1, num_tiles)
    in_specs = [
        pl.BlockSpec((tile_n, x_pad), x_map),                        # x tile (phase 0 only)
        aw_spec,                                                     # Aw (resident or streamed)
        pl.BlockSpec((tile_n, 1), lambda p, t: (t, 0)),              # degw tile
        full((g_pad, n_pad)),                                        # pool (bf16)
        full((x_pad, h_pad)), full((1, h_pad)),                      # node_emb W, b
        pl.BlockSpec((1, h_pad, h_pad), layer_idx),                  # W1[l]
        pl.BlockSpec((1, h_pad, 2 * h_pad), layer_idx),              # [W2|W3][l]
        pl.BlockSpec((1, 1, h_pad), layer_idx),                      # b1[l]
        pl.BlockSpec((1, 1, h_pad), layer_idx),                      # b3[l]
        full((h_pad, f1_pad)), full((1, f1_pad)),                    # fc1 W, b
        full((f1_pad, c_pad)), full((1, c_pad)),                     # fc2 W, b
    ]
    out_spec = pl.BlockSpec((g_pad, c_pad), lambda p, t: (0, 0))

    # VMEM budget: bf16 h scratch + every pipeline buffer counted double-buffered.
    dbl = lambda nbytes: 2 * nbytes
    aw_buf = (n_pad * n_pad * 2) if aw_resident else (tile_n * n_pad * 2)
    vmem_needed = (
        2 * n_pad * h_pad * 2                       # bf16 h scratch (layer ping-pong)
        + dbl(aw_buf)
        + dbl(tile_n * x_pad * 2) + dbl(tile_n * 4)
        + dbl(g_pad * n_pad * 2)
        + dbl(x_pad * h_pad * 2) + dbl(h_pad * 4)
        + dbl(h_pad * h_pad * 2) + dbl(h_pad * 2 * h_pad * 2)
        + 2 * dbl(h_pad * 4)
        + dbl(h_pad * f1_pad * 4) + dbl(f1_pad * 4)
        + dbl(f1_pad * c_pad * 4) + dbl(c_pad * 4)
        + g_pad * c_pad * 4)
    vmem_limit = int(min(max(vmem_needed * 5 // 4, 16 * 2**20), 60 * 2**20))

    # Advisory cost estimate (helps XLA schedule the Aw scatter / padding).
    flops = (2 * n_layers * (n_pad * n_pad * h_pad + 3 * n_pad * h_pad * h_pad)
             + 2 * n_pad * x_pad * h_pad + 2 * g_pad * n_pad * h_pad
             + 2 * g_pad * (h_pad * f1_pad + f1_pad * c_pad))
    aw_passes = 1 if aw_resident else n_layers
    bytes_accessed = (aw_passes * n_pad * n_pad * 2
                      + n_pad * x_pad * 2 + g_pad * n_pad * 2 + n_pad * 4
                      + n_layers * (3 * h_pad * h_pad * 2 + 2 * h_pad * 4)
                      + x_pad * h_pad * 2 + h_pad * f1_pad * 4
                      + f1_pad * c_pad * 4 + g_pad * c_pad * 4)
    cost = pl.CostEstimate(flops=int(flops), transcendentals=0,
                           bytes_accessed=int(bytes_accessed))

    kernel = functools.partial(spmotif_kernel, n_layers, num_tiles, tile_n,
                               n_pad, h_pad, aw_resident)
    out = pl.pallas_call(
        kernel,
        out_shape=jax.ShapeDtypeStruct((g_pad, c_pad), f32),
        grid=grid,
        in_specs=in_specs,
        out_specs=out_spec,
        scratch_shapes=[pltpu.VMEM((2 * n_pad, h_pad), bf16)],       # layer ping-pong h
        compiler_params=pltpu.CompilerParams(
            # Layer/phase axis is a true dependency chain; node tiles within a
            # layer read the full scratch-resident h of the previous layer, so
            # the tile axis must stay on one core as well ("arbitrary").
            dimension_semantics=("arbitrary", "arbitrary"),
            vmem_limit_bytes=vmem_limit,
        ),
        cost_estimate=cost,
    )(x_p, aw_b, degw, pool, w_emb, b_emb, w1, w23, b1, b3, wf1, bf1, wf2, bf2)
    return out[:num_graphs, :num_class]


def init_params(key, x_dim, hidden, num_class, n_layers):
    ks = jax.random.split(key, 11)
    u = lambda k, shape: jax.random.uniform(k, shape, jnp.float32, -0.1, 0.1)
    return dict(
        w_emb=u(ks[0], (x_dim, hidden)),          b_emb=u(ks[1], (hidden,)),
        w1=u(ks[2], (n_layers, hidden, hidden)),  b1=u(ks[3], (n_layers, hidden)),
        w2=u(ks[4], (n_layers, hidden, hidden)),
        w3=u(ks[5], (n_layers, hidden, hidden)),  b3=u(ks[6], (n_layers, hidden)),
        wf1=u(ks[7], (hidden, 2 * hidden)),       bf1=u(ks[8], (2 * hidden,)),
        wf2=u(ks[9], (2 * hidden, num_class)),    bf2=u(ks[10], (num_class,)),
    )


def ref_forward(x, edge_index, batch, edge_attr, params, *, n_layers, num_graphs):
    # pure-JAX reference (segment_sum based) for correctness checking
    h = x @ params['w_emb'] + params['b_emb']
    src, dst = edge_index[0], edge_index[1]
    ew = edge_attr.reshape(-1, 1)
    N = x.shape[0]
    for l in range(n_layers):
        a = h @ params['w1'][l] + params['b1'][l]
        b = h @ params['w2'][l]
        msg = (a[src] - b[dst]) * ew
        agg = jax.ops.segment_sum(msg, dst, num_segments=N)
        h = jnp.maximum(agg + h @ params['w3'][l] + params['b3'][l], 0.0)
    sums = jax.ops.segment_sum(h, batch, num_segments=num_graphs)
    cnts = jax.ops.segment_sum(jnp.ones((N, 1), jnp.float32), batch, num_segments=num_graphs)
    g = sums / jnp.maximum(cnts, 1.0)
    z = jnp.maximum(g @ params['wf1'] + params['bf1'], 0.0)
    return z @ params['wf2'] + params['bf2']


if __name__ == "__main__":
    # small SPMotif-like config: x_dim=4, hidden=32, n_layers=3, num_class=3
    x_dim, hidden, n_layers, num_class = 4, 32, 3, 3
    num_graphs, nodes_per_graph = 2, 8
    N = num_graphs * nodes_per_graph
    E_per_graph = 16
    E = num_graphs * E_per_graph

    key = jax.random.PRNGKey(0)
    kx, ks, kd, ka, kp = jax.random.split(key, 5)

    x = jax.random.normal(kx, (N, x_dim), jnp.float32)
    # edges stay within each graph
    src0 = jax.random.randint(ks, (E_per_graph,), 0, nodes_per_graph)
    dst0 = jax.random.randint(kd, (E_per_graph,), 0, nodes_per_graph)
    src = jnp.concatenate([src0, src0 + nodes_per_graph]).astype(jnp.int32)
    dst = jnp.concatenate([dst0, dst0 + nodes_per_graph]).astype(jnp.int32)
    edge_index = jnp.stack([src, dst], axis=0)                                     # [2, E]
    batch = jnp.repeat(jnp.arange(num_graphs), nodes_per_graph).astype(jnp.int32)  # [N]
    edge_attr = jax.random.uniform(ka, (E, 1), jnp.float32, 0.5, 1.5)              # [E, 1]

    params = init_params(kp, x_dim, hidden, num_class, n_layers)

    ref = ref_forward(x, edge_index, batch, edge_attr, params,
                      n_layers=n_layers, num_graphs=num_graphs)

    # Path 1: VMEM-resident Aw (small graphs).
    out = spmotif_forward(x, edge_index, batch, edge_attr, params,
                          n_layers=n_layers, num_graphs=num_graphs, num_class=num_class)
    out = jax.block_until_ready(out)
    assert out.shape == (num_graphs, num_class)
    err = float(jnp.max(jnp.abs(out - ref)))
    assert jnp.allclose(out, ref, atol=2e-2, rtol=2e-2), (out, ref, err)

    # Path 2: Aw row-block streaming (the large-graph fallback), exercised on
    # the same data to verify the phase-gated index maps.
    out_s = spmotif_forward(x, edge_index, batch, edge_attr, params,
                            n_layers=n_layers, num_graphs=num_graphs,
                            num_class=num_class, force_stream=True)
    out_s = jax.block_until_ready(out_s)
    err_s = float(jnp.max(jnp.abs(out_s - ref)))
    assert jnp.allclose(out_s, ref, atol=2e-2, rtol=2e-2), (out_s, ref, err_s)

    print("KERNEL_OK")
</pallas_src>

<mosaic_0001>
module attributes {stable_mosaic.version = 11 : i64} {
  func.func @spmotif_kernel(%arg0: i32, %arg1: i32, %arg2: memref<128x128xbf16, #tpu.memory_space<vmem>>, %arg3: memref<128x128xbf16, #tpu.memory_space<vmem>>, %arg4: memref<128x1xf32, #tpu.memory_space<vmem>>, %arg5: memref<8x128xbf16, #tpu.memory_space<vmem>>, %arg6: memref<128x128xbf16, #tpu.memory_space<vmem>>, %arg7: memref<1x128xf32, #tpu.memory_space<vmem>>, %arg8: memref<1x128x128xbf16, #tpu.memory_space<vmem>>, %arg9: memref<1x128x256xbf16, #tpu.memory_space<vmem>>, %arg10: memref<1x1x128xf32, #tpu.memory_space<vmem>>, %arg11: memref<1x1x128xf32, #tpu.memory_space<vmem>>, %arg12: memref<128x128xf32, #tpu.memory_space<vmem>>, %arg13: memref<1x128xf32, #tpu.memory_space<vmem>>, %arg14: memref<128x128xf32, #tpu.memory_space<vmem>>, %arg15: memref<1x128xf32, #tpu.memory_space<vmem>>, %arg16: memref<8x128xf32, #tpu.memory_space<vmem>>, %arg17: memref<256x128xbf16, #tpu.memory_space<vmem>>) attributes {dimension_semantics = [#tpu.dimension_semantics<arbitrary>, #tpu.dimension_semantics<arbitrary>], iteration_bounds = array<i64: 4, 1>, scalar_prefetch = 0 : i64, scratch_operands = 1 : i64, tpu.core_type = #tpu.core_type<tc>, window_params = [{transform_indices = @transform_0, window_bounds = array<i64: 128, 128>}, {pipeline_mode = #tpu.pipeline_mode<synchronous>, transform_indices = @transform_1, window_bounds = array<i64: 128, 128>}, {transform_indices = @transform_2, window_bounds = array<i64: 128, 1>}, {pipeline_mode = #tpu.pipeline_mode<synchronous>, transform_indices = @transform_3, window_bounds = array<i64: 8, 128>}, {pipeline_mode = #tpu.pipeline_mode<synchronous>, transform_indices = @transform_4, window_bounds = array<i64: 128, 128>}, {pipeline_mode = #tpu.pipeline_mode<synchronous>, transform_indices = @transform_5, window_bounds = array<i64: 1, 128>}, {transform_indices = @transform_6, window_bounds = array<i64: 1, 128, 128>}, {transform_indices = @transform_7, window_bounds = array<i64: 1, 128, 256>}, {transform_indices = @transform_8, window_bounds = array<i64: 1, 1, 128>}, {transform_indices = @transform_9, window_bounds = array<i64: 1, 1, 128>}, {pipeline_mode = #tpu.pipeline_mode<synchronous>, transform_indices = @transform_10, window_bounds = array<i64: 128, 128>}, {pipeline_mode = #tpu.pipeline_mode<synchronous>, transform_indices = @transform_11, window_bounds = array<i64: 1, 128>}, {pipeline_mode = #tpu.pipeline_mode<synchronous>, transform_indices = @transform_12, window_bounds = array<i64: 128, 128>}, {pipeline_mode = #tpu.pipeline_mode<synchronous>, transform_indices = @transform_13, window_bounds = array<i64: 1, 128>}, {pipeline_mode = #tpu.pipeline_mode<synchronous>, transform_indices = @transform_14, window_bounds = array<i64: 8, 128>}]} {
    %c2_i32 = arith.constant 2 : i32
    %c0_i32 = arith.constant 0 : i32
    %0 = arith.cmpi eq, %c2_i32, %c0_i32 : i32
    %c1_i32 = arith.constant 1 : i32
    %1 = arith.select %0, %c1_i32, %c2_i32 : i32
    %2 = arith.remsi %arg0, %1 : i32
    %c0_i32_0 = arith.constant 0 : i32
    %3 = arith.cmpi ne, %2, %c0_i32_0 : i32
    %c0_i32_1 = arith.constant 0 : i32
    %4 = arith.cmpi slt, %2, %c0_i32_1 : i32
    %c0_i32_2 = arith.constant 0 : i32
    %5 = arith.cmpi slt, %1, %c0_i32_2 : i32
    %6 = arith.xori %4, %5 : i1
    %7 = arith.andi %6, %3 : i1
    %8 = arith.addi %2, %1 : i32
    %9 = arith.select %7, %8, %2 : i32
    %c1_i32_3 = arith.constant 1 : i32
    %10 = arith.addi %arg0, %c1_i32_3 : i32
    %c2_i32_4 = arith.constant 2 : i32
    %c0_i32_5 = arith.constant 0 : i32
    %11 = arith.cmpi eq, %c2_i32_4, %c0_i32_5 : i32
    %c1_i32_6 = arith.constant 1 : i32
    %12 = arith.select %11, %c1_i32_6, %c2_i32_4 : i32
    %13 = arith.remsi %10, %12 : i32
    %c0_i32_7 = arith.constant 0 : i32
    %14 = arith.cmpi ne, %13, %c0_i32_7 : i32
    %c0_i32_8 = arith.constant 0 : i32
    %15 = arith.cmpi slt, %13, %c0_i32_8 : i32
    %c0_i32_9 = arith.constant 0 : i32
    %16 = arith.cmpi slt, %12, %c0_i32_9 : i32
    %17 = arith.xori %15, %16 : i1
    %18 = arith.andi %17, %14 : i1
    %19 = arith.addi %13, %12 : i32
    %20 = arith.select %18, %19, %13 : i32
    %c128_i32 = arith.constant 128 : i32
    %21 = arith.muli %9, %c128_i32 : i32
    %c128_i32_10 = arith.constant 128 : i32
    %22 = arith.muli %arg1, %c128_i32_10 : i32
    %23 = arith.addi %21, %22 : i32
    %24 = tpu.assume_multiple %23, 128 : i32
    %c128_i32_11 = arith.constant 128 : i32
    %25 = arith.muli %20, %c128_i32_11 : i32
    %26 = tpu.assume_multiple %25, 128 : i32
    %c128_i32_12 = arith.constant 128 : i32
    %27 = arith.muli %20, %c128_i32_12 : i32
    %c128_i32_13 = arith.constant 128 : i32
    %28 = arith.muli %arg1, %c128_i32_13 : i32
    %29 = arith.addi %27, %28 : i32
    %30 = tpu.assume_multiple %29, 128 : i32
    %c0_i32_14 = arith.constant 0 : i32
    %31 = arith.cmpi eq, %arg0, %c0_i32_14 : i32
    %c0_i32_15 = arith.constant 0 : i32
    %32 = arith.cmpi eq, %arg1, %c0_i32_15 : i32
    %33 = arith.andi %31, %32 : i1
    %34 = arith.extui %33 : i1 to i32
    %c0_i32_16 = arith.constant 0 : i32
    %35 = arith.cmpi ne, %34, %c0_i32_16 : i32
    scf.if %35 {
      %cst = arith.constant 0.000000e+00 : f32
      %47 = vector.broadcast %cst : f32 to vector<8x128xf32>
      %c0 = arith.constant 0 : index
      %c0_23 = arith.constant 0 : index
      %48 = vector.load %arg16[%c0, %c0_23] : memref<8x128xf32, #tpu.memory_space<vmem>>, vector<8x128xf32>
      tpu.vector_store %arg16[%c0, %c0_23], %47 {strides = array<i32>} : memref<8x128xf32, #tpu.memory_space<vmem>>, vector<8x128xf32>,
    } else {
    }
    %c0_i32_17 = arith.constant 0 : i32
    %36 = arith.cmpi eq, %arg0, %c0_i32_17 : i32
    %37 = arith.extui %36 : i1 to i32
    %c0_i32_18 = arith.constant 0 : i32
    %38 = arith.cmpi ne, %37, %c0_i32_18 : i32
    scf.if %38 {
      %c0 = arith.constant 0 : index
      %c0_23 = arith.constant 0 : index
      %47 = vector.load %arg2[%c0, %c0_23] : memref<128x128xbf16, #tpu.memory_space<vmem>>, vector<128x128xbf16>
      %c0_24 = arith.constant 0 : index
      %c0_25 = arith.constant 0 : index
      %48 = vector.load %arg6[%c0_24, %c0_25] : memref<128x128xbf16, #tpu.memory_space<vmem>>, vector<128x128xbf16>
      %cst = arith.constant dense<0.000000e+00> : vector<128x128xf32>
      %49 = tpu.matmul %47, %48, %cst {dimension_numbers = #tpu.dot_dimension_numbers<[1], [0], [0], [1], [0, 0, 1, 1], [], []>} : vector<128x128xbf16>, vector<128x128xbf16>, vector<128x128xf32> -> vector<128x128xf32>
      %c0_26 = arith.constant 0 : index
      %c0_27 = arith.constant 0 : index
      %50 = vector.load %arg7[%c0_26, %c0_27] : memref<1x128xf32, #tpu.memory_space<vmem>>, vector<1x128xf32>
      %51 = vector.broadcast %50 : vector<1x128xf32> to vector<128x128xf32>
      %52 = arith.addf %49, %51 : vector<128x128xf32>
      %53 = arith.truncf %52 : vector<128x128xf32> to vector<128x128xbf16>
      %54 = arith.index_cast %24 : i32 to index
      %c0_28 = arith.constant 0 : index
      %55 = vector.load %arg17[%54, %c0_28] : memref<256x128xbf16, #tpu.memory_space<vmem>>, vector<128x128xbf16>
      tpu.vector_store %arg17[%54, %c0_28], %53 {strides = array<i32>} : memref<256x128xbf16, #tpu.memory_space<vmem>>, vector<128x128xbf16>,
    } else {
    }
    %c0_i32_19 = arith.constant 0 : i32
    %39 = arith.cmpi sgt, %arg0, %c0_i32_19 : i32
    %40 = arith.extui %39 : i1 to i32
    %c0_i32_20 = arith.constant 0 : i32
    %41 = arith.cmpi ne, %40, %c0_i32_20 : i32
    scf.if %41 {
      %47 = arith.index_cast %26 : i32 to index
      %c0 = arith.constant 0 : index
      %48 = vector.load %arg17[%47, %c0] : memref<256x128xbf16, #tpu.memory_space<vmem>>, vector<128x128xbf16>
      %49 = arith.index_cast %30 : i32 to index
      %c0_23 = arith.constant 0 : index
      %50 = vector.load %arg17[%49, %c0_23] : memref<256x128xbf16, #tpu.memory_space<vmem>>, vector<128x128xbf16>
      %c128_i32_24 = arith.constant 128 : i32
      %51 = arith.muli %arg1, %c128_i32_24 : i32
      %52 = tpu.assume_multiple %51, 128 : i32
      %53 = arith.index_cast %52 : i32 to index
      %c0_25 = arith.constant 0 : index
      %54 = vector.load %arg3[%53, %c0_25] : memref<128x128xbf16, #tpu.memory_space<vmem>>, vector<128x128xbf16>
      %cst = arith.constant dense<0.000000e+00> : vector<128x128xf32>
      %55 = tpu.matmul %54, %48, %cst {dimension_numbers = #tpu.dot_dimension_numbers<[1], [0], [0], [1], [0, 0, 1, 1], [], []>} : vector<128x128xbf16>, vector<128x128xbf16>, vector<128x128xf32> -> vector<128x128xf32>
      %56 = arith.truncf %55 : vector<128x128xf32> to vector<128x128xbf16>
      %c0_26 = arith.constant 0 : index
      %c0_27 = arith.constant 0 : index
      %c0_28 = arith.constant 0 : index
      %57 = vector.load %arg8[%c0_26, %c0_27, %c0_28] : memref<1x128x128xbf16, #tpu.memory_space<vmem>>, vector<1x128x128xbf16>
      %58 = vector.shape_cast %57 : vector<1x128x128xbf16> to vector<128x128xbf16>
      %cst_29 = arith.constant dense<0.000000e+00> : vector<128x128xf32>
      %59 = tpu.matmul %56, %58, %cst_29 {dimension_numbers = #tpu.dot_dimension_numbers<[1], [0], [0], [1], [0, 0, 1, 1], [], []>} : vector<128x128xbf16>, vector<128x128xbf16>, vector<128x128xf32> -> vector<128x128xf32>
      %c0_30 = arith.constant 0 : index
      %c0_31 = arith.constant 0 : index
      %c0_32 = arith.constant 0 : index
      %60 = vector.load %arg9[%c0_30, %c0_31, %c0_32] : memref<1x128x256xbf16, #tpu.memory_space<vmem>>, vector<1x128x256xbf16>
      %61 = vector.shape_cast %60 : vector<1x128x256xbf16> to vector<128x256xbf16>
      %cst_33 = arith.constant dense<0.000000e+00> : vector<128x256xf32>
      %62 = tpu.matmul %50, %61, %cst_33 {dimension_numbers = #tpu.dot_dimension_numbers<[1], [0], [0], [1], [0, 0, 1, 1], [], []>} : vector<128x128xbf16>, vector<128x256xbf16>, vector<128x256xf32> -> vector<128x256xf32>
      %63 = vector.extract_strided_slice %62 {offsets = [0, 0], sizes = [128, 128], strides = [1, 1]} : vector<128x256xf32> to vector<128x128xf32>
      %64 = vector.extract_strided_slice %62 {offsets = [0, 128], sizes = [128, 128], strides = [1, 1]} : vector<128x256xf32> to vector<128x128xf32>
      %c0_34 = arith.constant 0 : index
      %c0_35 = arith.constant 0 : index
      %65 = vector.load %arg4[%c0_34, %c0_35] : memref<128x1xf32, #tpu.memory_space<vmem>>, vector<128x1xf32>
      %c0_36 = arith.constant 0 : index
      %c0_37 = arith.constant 0 : index
      %c0_38 = arith.constant 0 : index
      %66 = vector.load %arg10[%c0_36, %c0_37, %c0_38] : memref<1x1x128xf32, #tpu.memory_space<vmem>>, vector<1x1x128xf32>
      %67 = vector.shape_cast %66 : vector<1x1x128xf32> to vector<1x128xf32>
      %68 = vector.broadcast %67 : vector<1x128xf32> to vector<128x128xf32>
      %69 = arith.subf %68, %63 : vector<128x128xf32>
      %70 = vector.broadcast %65 : vector<128x1xf32> to vector<128x128xf32>
      %71 = arith.mulf %70, %69 : vector<128x128xf32>
      %72 = arith.addf %59, %71 : vector<128x128xf32>
      %73 = arith.addf %72, %64 : vector<128x128xf32>
      %c0_39 = arith.constant 0 : index
      %c0_40 = arith.constant 0 : index
      %c0_41 = arith.constant 0 : index
      %74 = vector.load %arg11[%c0_39, %c0_40, %c0_41] : memref<1x1x128xf32, #tpu.memory_space<vmem>>, vector<1x1x128xf32>
      %75 = vector.shape_cast %74 : vector<1x1x128xf32> to vector<1x128xf32>
      %76 = vector.broadcast %75 : vector<1x128xf32> to vector<128x128xf32>
      %77 = arith.addf %73, %76 : vector<128x128xf32>
      %cst_42 = arith.constant 0.000000e+00 : f32
      %78 = vector.broadcast %cst_42 : f32 to vector<128x128xf32>
      %79 = arith.maximumf %77, %78 : vector<128x128xf32>
      %80 = arith.truncf %79 : vector<128x128xf32> to vector<128x128xbf16>
      %81 = arith.index_cast %24 : i32 to index
      %c0_43 = arith.constant 0 : index
      %82 = vector.load %arg17[%81, %c0_43] : memref<256x128xbf16, #tpu.memory_space<vmem>>, vector<128x128xbf16>
      tpu.vector_store %arg17[%81, %c0_43], %80 {strides = array<i32>} : memref<256x128xbf16, #tpu.memory_space<vmem>>, vector<128x128xbf16>,
    } else {
    }
    %c3_i32 = arith.constant 3 : i32
    %42 = arith.cmpi eq, %arg0, %c3_i32 : i32
    %c0_i32_21 = arith.constant 0 : i32
    %43 = arith.cmpi eq, %arg1, %c0_i32_21 : i32
    %44 = arith.andi %42, %43 : i1
    %45 = arith.extui %44 : i1 to i32
    %c0_i32_22 = arith.constant 0 : i32
    %46 = arith.cmpi ne, %45, %c0_i32_22 : i32
    scf.if %46 {
      %c128 = arith.constant 128 : index
      %c0 = arith.constant 0 : index
      %47 = vector.load %arg17[%c128, %c0] : memref<256x128xbf16, #tpu.memory_space<vmem>>, vector<128x128xbf16>
      %c0_23 = arith.constant 0 : index
      %c0_24 = arith.constant 0 : index
      %48 = vector.load %arg5[%c0_23, %c0_24] : memref<8x128xbf16, #tpu.memory_space<vmem>>, vector<8x128xbf16>
      %cst = arith.constant dense<0.000000e+00> : vector<8x128xf32>
      %49 = tpu.matmul %48, %47, %cst {dimension_numbers = #tpu.dot_dimension_numbers<[1], [0], [0], [1], [0, 0, 1, 1], [], []>} : vector<8x128xbf16>, vector<128x128xbf16>, vector<8x128xf32> -> vector<8x128xf32>
      %c0_25 = arith.constant 0 : index
      %c0_26 = arith.constant 0 : index
      %50 = vector.load %arg12[%c0_25, %c0_26] : memref<128x128xf32, #tpu.memory_space<vmem>>, vector<128x128xf32>
      %cst_27 = arith.constant dense<0.000000e+00> : vector<8x128xf32>
      %51 = tpu.matmul %49, %50, %cst_27 {dimension_numbers = #tpu.dot_dimension_numbers<[1], [0], [0], [1], [0, 0, 1, 1], [], []>} : vector<8x128xf32>, vector<128x128xf32>, vector<8x128xf32> -> vector<8x128xf32>
      %c0_28 = arith.constant 0 : index
      %c0_29 = arith.constant 0 : index
      %52 = vector.load %arg13[%c0_28, %c0_29] : memref<1x128xf32, #tpu.memory_space<vmem>>, vector<1x128xf32>
      %53 = vector.broadcast %52 : vector<1x128xf32> to vector<8x128xf32>
      %54 = arith.addf %51, %53 : vector<8x128xf32>
      %cst_30 = arith.constant 0.000000e+00 : f32
      %55 = vector.broadcast %cst_30 : f32 to vector<8x128xf32>
      %56 = arith.maximumf %54, %55 : vector<8x128xf32>
      %c0_31 = arith.constant 0 : index
      %c0_32 = arith.constant 0 : index
      %57 = vector.load %arg14[%c0_31, %c0_32] : memref<128x128xf32, #tpu.memory_space<vmem>>, vector<128x128xf32>
      %cst_33 = arith.constant dense<0.000000e+00> : vector<8x128xf32>
      %58 = tpu.matmul %56, %57, %cst_33 {dimension_numbers = #tpu.dot_dimension_numbers<[1], [0], [0], [1], [0, 0, 1, 1], [], []>} : vector<8x128xf32>, vector<128x128xf32>, vector<8x128xf32> -> vector<8x128xf32>
      %c0_34 = arith.constant 0 : index
      %c0_35 = arith.constant 0 : index
      %59 = vector.load %arg15[%c0_34, %c0_35] : memref<1x128xf32, #tpu.memory_space<vmem>>, vector<1x128xf32>
      %60 = vector.broadcast %59 : vector<1x128xf32> to vector<8x128xf32>
      %61 = arith.addf %58, %60 : vector<8x128xf32>
      %c0_36 = arith.constant 0 : index
      %c0_37 = arith.constant 0 : index
      %62 = vector.load %arg16[%c0_36, %c0_37] : memref<8x128xf32, #tpu.memory_space<vmem>>, vector<8x128xf32>
      tpu.vector_store %arg16[%c0_36, %c0_37], %61 {strides = array<i32>} : memref<8x128xf32, #tpu.memory_space<vmem>>, vector<8x128xf32>,
    } else {
    }
    return
  }
  func.func @transform_0(%arg0: i32, %arg1: i32) -> (i32, i32) {
    %c1_i32 = arith.constant 1 : i32
    %0 = arith.minsi %arg0, %c1_i32 : i32
    %c1_i32_0 = arith.constant 1 : i32
    %1 = arith.subi %c1_i32_0, %0 : i32
    %2 = arith.muli %arg1, %1 : i32
    %c0_i32 = arith.constant 0 : i32
    %c0_i32_1 = arith.constant 0 : i32
    return %2, %c0_i32 : i32, i32
  }
  func.func @transform_1(%arg0: i32, %arg1: i32) -> (i32, i32) {
    %c0_i32 = arith.constant 0 : i32
    %c0_i32_0 = arith.constant 0 : i32
    %c0_i32_1 = arith.constant 0 : i32
    return %c0_i32, %c0_i32_0 : i32, i32
  }
  func.func @transform_2(%arg0: i32, %arg1: i32) -> (i32, i32) {
    %c0_i32 = arith.constant 0 : i32
    %c0_i32_0 = arith.constant 0 : i32
    return %arg1, %c0_i32 : i32, i32
  }
  func.func @transform_3(%arg0: i32, %arg1: i32) -> (i32, i32) {
    %c0_i32 = arith.constant 0 : i32
    %c0_i32_0 = arith.constant 0 : i32
    %c0_i32_1 = arith.constant 0 : i32
    return %c0_i32, %c0_i32_0 : i32, i32
  }
  func.func @transform_4(%arg0: i32, %arg1: i32) -> (i32, i32) {
    %c0_i32 = arith.constant 0 : i32
    %c0_i32_0 = arith.constant 0 : i32
    %c0_i32_1 = arith.constant 0 : i32
    return %c0_i32, %c0_i32_0 : i32, i32
  }
  func.func @transform_5(%arg0: i32, %arg1: i32) -> (i32, i32) {
    %c0_i32 = arith.constant 0 : i32
    %c0_i32_0 = arith.constant 0 : i32
    %c0_i32_1 = arith.constant 0 : i32
    return %c0_i32, %c0_i32_0 : i32, i32
  }
  func.func @transform_6(%arg0: i32, %arg1: i32) -> (i32, i32, i32) {
    %c1_i32 = arith.constant 1 : i32
    %0 = arith.subi %arg0, %c1_i32 : i32
    %c0_i32 = arith.constant 0 : i32
    %1 = arith.maxsi %0, %c0_i32 : i32
    %c0_i32_0 = arith.constant 0 : i32
    %c0_i32_1 = arith.constant 0 : i32
    %c0_i32_2 = arith.constant 0 : i32
    return %1, %c0_i32_0, %c0_i32_1 : i32, i32, i32
  }
  func.func @transform_7(%arg0: i32, %arg1: i32) -> (i32, i32, i32) {
    %c1_i32 = arith.constant 1 : i32
    %0 = arith.subi %arg0, %c1_i32 : i32
    %c0_i32 = arith.constant 0 : i32
    %1 = arith.maxsi %0, %c0_i32 : i32
    %c0_i32_0 = arith.constant 0 : i32
    %c0_i32_1 = arith.constant 0 : i32
    %c0_i32_2 = arith.constant 0 : i32
    return %1, %c0_i32_0, %c0_i32_1 : i32, i32, i32
  }
  func.func @transform_8(%arg0: i32, %arg1: i32) -> (i32, i32, i32) {
    %c1_i32 = arith.constant 1 : i32
    %0 = arith.subi %arg0, %c1_i32 : i32
    %c0_i32 = arith.constant 0 : i32
    %1 = arith.maxsi %0, %c0_i32 : i32
    %c0_i32_0 = arith.constant 0 : i32
    %c0_i32_1 = arith.constant 0 : i32
    %c0_i32_2 = arith.constant 0 : i32
    return %1, %c0_i32_0, %c0_i32_1 : i32, i32, i32
  }
  func.func @transform_9(%arg0: i32, %arg1: i32) -> (i32, i32, i32) {
    %c1_i32 = arith.constant 1 : i32
    %0 = arith.subi %arg0, %c1_i32 : i32
    %c0_i32 = arith.constant 0 : i32
    %1 = arith.maxsi %0, %c0_i32 : i32
    %c0_i32_0 = arith.constant 0 : i32
    %c0_i32_1 = arith.constant 0 : i32
    %c0_i32_2 = arith.constant 0 : i32
    return %1, %c0_i32_0, %c0_i32_1 : i32, i32, i32
  }
  func.func @transform_10(%arg0: i32, %arg1: i32) -> (i32, i32) {
    %c0_i32 = arith.constant 0 : i32
    %c0_i32_0 = arith.constant 0 : i32
    %c0_i32_1 = arith.constant 0 : i32
    return %c0_i32, %c0_i32_0 : i32, i32
  }
  func.func @transform_11(%arg0: i32, %arg1: i32) -> (i32, i32) {
    %c0_i32 = arith.constant 0 : i32
    %c0_i32_0 = arith.constant 0 : i32
    %c0_i32_1 = arith.constant 0 : i32
    return %c0_i32, %c0_i32_0 : i32, i32
  }
  func.func @transform_12(%arg0: i32, %arg1: i32) -> (i32, i32) {
    %c0_i32 = arith.constant 0 : i32
    %c0_i32_0 = arith.constant 0 : i32
    %c0_i32_1 = arith.constant 0 : i32
    return %c0_i32, %c0_i32_0 : i32, i32
  }
  func.func @transform_13(%arg0: i32, %arg1: i32) -> (i32, i32) {
    %c0_i32 = arith.constant 0 : i32
    %c0_i32_0 = arith.constant 0 : i32
    %c0_i32_1 = arith.constant 0 : i32
    return %c0_i32, %c0_i32_0 : i32, i32
  }
  func.func @transform_14(%arg0: i32, %arg1: i32) -> (i32, i32) {
    %c0_i32 = arith.constant 0 : i32
    %c0_i32_0 = arith.constant 0 : i32
    %c0_i32_1 = arith.constant 0 : i32
    return %c0_i32, %c0_i32_0 : i32, i32
  }
}

</mosaic_0001>

<bundles_post_ra>
// kernel: tpu_custom_call.1
= control target key start
LH: loop header
LB: loop body
LE: loop exit
PB: predicated region body
PF: predicated region fallthrough
CT: control target
= control target key end

     0   :  { %s3959_s0 = inlined_call_operand.hbm [shape: bf16[128,128], index: 0, kind: input, shape index: {}]   ;;  %s3960_s1 = inlined_call_operand.hbm [shape: bf16[128,128], index: 1, kind: input, shape index: {}]   ;;  %s3961_s2 = inlined_call_operand.vmem [shape: f32[128,1], index: 2, kind: input, shape index: {}]   ;;  %s3962_s3 = inlined_call_operand.vmem [shape: bf16[8,128], index: 3, kind: input, shape index: {}]   ;;  %s3963_s4 = inlined_call_operand.hbm [shape: bf16[128,128], index: 4, kind: input, shape index: {}]   ;;  %s3964_s5 = inlined_call_operand.vmem [shape: f32[1,128], index: 5, kind: input, shape index: {}]   ;;  %s3965_s6 = inlined_call_operand.hbm [shape: bf16[3,128,128], index: 6, kind: input, shape index: {}]   ;;  %s3966_s7 = inlined_call_operand.hbm [shape: bf16[3,128,256], index: 7, kind: input, shape index: {}]   ;;  %s3967_s8 = inlined_call_operand.vmem [shape: f32[3,1,128], index: 8, kind: input, shape index: {}]   ;;  %s3968_s9 = inlined_call_operand.vmem [shape: f32[3,1,128], index: 9, kind: input, shape index: {}]   ;;  %s3969_s10 = inlined_call_operand.vmem [shape: f32[128,128], index: 10, kind: input, shape index: {}]   ;;  %s3970_s11 = inlined_call_operand.vmem [shape: f32[1,128], index: 11, kind: input, shape index: {}]   ;;  %s3971_s12 = inlined_call_operand.hbm [shape: f32[128,128], index: 12, kind: input, shape index: {}]   ;;  %s3972_s13 = inlined_call_operand.vmem [shape: f32[1,128], index: 13, kind: input, shape index: {}]   ;;  %s3973_s14 = inlined_call_operand.hbm [shape: f32[8,128], index: 14, kind: output, shape index: {}]  }
   0x1   :  { %3994 = sst [smem:[#allocation24_spill]] %s3960_s1 }
   0x2   :  { %3995 = sst [smem:[#allocation25_spill]] %s3961_s2 }
   0x3   :  { %3996 = sst [smem:[#allocation26_spill]] %s3962_s3 }
   0x4   :  { %3997 = sst [smem:[#allocation27_spill]] %s3964_s5 }
   0x5   :  { %3998 = sst [smem:[#allocation28_spill]] %s3965_s6 }
   0x6   :  { %3999 = sst [smem:[#allocation29_spill]] %s3967_s8 }
   0x7   :  { %4000 = sst [smem:[#allocation30_spill]] %s3968_s9 }
   0x8   :  { %4001 = sst [smem:[#allocation31_spill]] %s3969_s10 }
   0x9   :  { %4002 = sst [smem:[#allocation32_spill]] %s3970_s11 }
   0xa   :  { %4003 = sst [smem:[#allocation33_spill]] %s3972_s13 }
   0xb   :  { %4004 = sst [smem:[#allocation34_spill]] %s3973_s14 }
   0xc   :  { %19 = vsyncpa [#allocation4], 0 }
   0xd   :  { %21 = vsyncpa [#allocation4 + $0x1], 0 }
   0xe   :  { %22 = vsyncpa [#allocation7], 0 }
   0xf   :  { %23 = vsyncpa [#allocation10], 0 }
  0x10   :  { %25 = vsyncpa [#allocation10 + $0x1], 0 }
  0x11   :  { %26 = vsyncpa [#allocation13], 0 }
  0x12   :  { %27 = vsyncpa [#allocation5], 0  ;;  %s3234_s29 = smov 0   ;;  %s3236_s30 = smov 0  }
  0x13   :  { %s3238_s15 = smov 0   ;;  %s3240_s16 = smov 0  }
  0x14   :  { %s3242_s17 = smov 0   ;;  %s3244_s18 = smov 0  }
  0x15 LB: > { %4005 = sst [smem:[#allocation20_spill]] %s3129_s15  ;;  %s3263_s19 = sadd.s32 4294967295, %s3141_s18   ;;  %s3141_s18 = sphi %s3244_s18, %s33_s18   ;;  %s3137_s17 = sphi %s3242_s17, %s4049_s17   ;;  %s3133_s16 = sphi %s3240_s16, %s4048_s16   ;;  %s3129_s15 = sphi %s3238_s15, %s4047_s15   ;;  %s3125_s30 = sphi %s3236_s30, %s4051_s30   ;;  %s3121_s29 = sphi %s3234_s29, %s4050_s29  }
  0x16   : > { %4006 = sst [smem:[#allocation21_spill]] %s3137_s17  ;;  %p215_p0 = scmp.ne.s32.totalorder %s3125_s30, %s3121_s29 }
  0x17   : > { %p3975_p1 = scmp.eq.s32.totalorder %s3263_s19, 0  ;;  %p2246_p2 = scmp.ge.s32.totalorder %s3141_s18, 1 }
  0x18   : > { %p427_p3 = scmp.lt.s32.totalorder %s3141_s18, 5  ;;  %s3143_s22 = smov [#allocation6]  }
  0x19   : > { %p3271_p4 = por %p3975_p1, %p215_p0  ;;  %s439_s23 = sshll.u32 %s3143_s22, 4  ;;  %s440_s23 = int_to_ptr.vmem [resolvable:$true] %s439_s23 }
  0x1a   : > { %p3275_p5 = pnand %p2246_p2, %p427_p3  ;;  %s4010_s1 = sld [smem:[#allocation24_spill]] }
  0x1b   : > { %s4007_s20 = scalar_select %p3271_p4, 1, 0 }
  0x1c   : > { %s4008_s21 = scalar_select %p3275_p5, 1, 0 }
  0x1d   : > { %p2726_p6 = pneg %p3275_p5 }
  0x1f   : > { %p3283_p7 = pnand %p2726_p6, %p3975_p1 }
  0x20   : > { %s2877_s27 = scalar_lea.hbm %s4010_s1, 1024 }
  0x21   : > { %s4009_s24 = scalar_select %p3283_p7, 1, 0 }
  0x22   : > { %p2878_p8 = scmp.ne.s32.totalorder %s4010_s1, %s2877_s27  ;;  %p3295_p9 = pneg %p3283_p7 }
  0x23   : > { %p2884_p12 = scmp.lt.u32.totalorder %s2877_s27, %s4010_s1 }
  0x24   : > { %p2880_p10 = pnand %p3295_p9, %p2878_p8 }
  0x26   : > { %p2881_p11 = pneg %p2880_p10 }
  0x28   : > { %p2886_p13 = pnand %p2884_p12, %p2881_p11 }
  0x2a   : > { %2889 = shalt.err (!%p2886_p13)
}
  0x2b   : > { %s2890_s25 = scalar_lea.vmem %s440_s23, 1024  ;;  %p2898_p6 = scmp.lt.s32.totalorder %s440_s23, %s440_s23 }
  0x2c   : > { %p2891_p0 = scmp.ne.s32.totalorder %s440_s23, %s2890_s25  ;;  %p2899_p1 = scmp.lt.s32.totalorder %s2890_s25, %s2890_s25 }
  0x2e   : > { %p2893_p2 = pnand %p2891_p0, %p3295_p9  ;;  %p2900_p4 = por %p2899_p1, %p2898_p6 }
  0x30   : > { %p2894_p3 = pneg %p2893_p2 }
  0x32   : > { %p2901_p5 = pnand %p2900_p4, %p2894_p3 }
  0x34   : > { %2904 = shalt.err (!%p2901_p5)
}
  0x35   : > { %s3978_s26 = smov 64   ;;  %s3980_s13 = smov 4  }
  0x36   : > { %2729 = dma.hbm_to_vmem [thread:$0]  (!%p3283_p7), %s4010_s1, 1024, %s440_s23, [#allocation7], %s3978_s26, %s3978_s26, %s3980_s13  }
  0x37   : > { %s45_s28 = sadd.s32 1, %s3137_s17  ;;  %s2238_s29 = sadd.s32 4294967295, %s3137_s17 }
  0x38   : > { %p47_p1 = scmp.ge.s32.totalorder %s45_s28, 4  ;;  %p194_p4 = scmp.gt.s32.totalorder %s2238_s29, 0 }
  0x39   : > { %s202_s25 = sadd.s32 1, %s3129_s15  ;;  %p209_p5 = scmp.ne.s32.totalorder %s3129_s15, %s3125_s30 }
  0x3a   : > { %s4053_s28 = smov (%p47_p1, %s45_s28), 0  ;;  %s4055_s29 = smov (!%p194_p4, %s2238_s29), 0 }
  0x3b   : > { %4012 = sst [smem:[#allocation22_spill]] %s4053_s28  ;;  %s2239_s11 = sadd.s32 4294967295, %s4053_s28 }
  0x3c   : > { %p3988_p8 = scmp.eq.s32.totalorder %s3141_s18, 0  ;;  %p197_p10 = scmp.gt.s32.totalorder %s2239_s11, 0 }
  0x3d   : > { %p3987_p11 = scmp.lt.s32.totalorder %s3141_s18, 4  ;;  %s528_s14 = sand.u32 1, %s3141_s18  }
  0x3e   : > { %p3328_p12 = por %p3988_p8, %p209_p5  ;;  %s4057_s11 = smov (!%p197_p10, %s2239_s11), 0 }
  0x3f   : > { %s530_s27 = sand.u32 1, %s3129_s15   ;;  %s199_s26 = ssub.s32 %s4055_s29, %s4057_s11 }
  0x40   : > { %s2253_s13 = sshll.u32 %s530_s27, 6  ;;  %p200_p13 = scmp.eq.s32.totalorder %s199_s26, 0 }
  0x41   : > { %s2353_s1 = sshll.u32 %s4055_s29, 10  ;;  %s532_s17 = scalar_lea.vmem [#allocation9], %s2253_s13 }
  0x42   : > { %s542_s3 = sshll.u32 %s532_s17, 4  ;;  %s4015_s6 = sld [smem:[#allocation28_spill]]  ;;  %s3344_s3 = int_to_ptr.vmem [resolvable:$true] %s542_s3 }
  0x43   : > { %s3337_s28 = scalar_select %p200_p13, %s3129_s15, %s202_s25  }
  0x44   : > { %p3350_p0 = pnand %p3987_p11, %p3328_p12  ;;  %s2257_s17 = sshll.u32 %s530_s27, 7 }
  0x45   : > { %4014 = sst [smem:[#allocation23_spill]] %s3337_s28  ;;  %s556_s26 = scalar_lea.vmem [#allocation11], %s2257_s17 }
  0x46   : > { %s4016_s11 = scalar_select %p3350_p0, 1, 0 }
  0x47   : > { %s3354_s13 = sshll.u32 %s556_s26, 4  ;;  %p3991_p3 = pneg %p3350_p0  ;;  %s3463_s13 = int_to_ptr.vmem [resolvable:$true] %s3354_s13 }
  0x48   : > { %s3342_s5 = scalar_lea.hbm %s4015_s6, %s2353_s1  ;;  %s3356_s1 = scalar_lea.sflag [#allocation10], %s528_s14 }
  0x49   : > { %s2905_s2 = scalar_lea.hbm %s3342_s5, 1024  ;;  %s2910_s23 = scalar_lea.hbm %s4015_s6, 3072 }
  0x4a   : > { %p2906_p2 = scmp.ne.s32.totalorder %s3342_s5, %s2905_s2  ;;  %p2911_p4 = scmp.lt.u32.totalorder %s3342_s5, %s4015_s6 }
  0x4b   : > { %p2912_p5 = scmp.lt.u32.totalorder %s2910_s23, %s2905_s2  ;;  %p2914_p12 = scmp.lt.u32.totalorder %s2905_s2, %s3342_s5 }
  0x4c   : > { %p2908_p6 = pnand %p3991_p3, %p2906_p2 }
  0x4d   : > { %p2913_p10 = por %p2912_p5, %p2911_p4 }
  0x4e   : > { %p2909_p1 = pneg %p2908_p6 }
  0x4f   : > { %p2915_p13 = por %p2914_p12, %p2913_p10 }
  0x51   : > { %p2916_p11 = pnand %p2915_p13, %p2909_p1 }
  0x53   : > { %2919 = shalt.err (!%p2916_p11)
}
  0x54   : > { %s2920_s14 = scalar_lea.vmem %s3344_s3, 1024  ;;  %s3146_s27 = smov [#allocation9]  }
  0x55   : > { %p2921_p2 = scmp.ne.s32.totalorder %s3344_s3, %s2920_s14  ;;  %s2925_s17 = sshll.u32 %s3146_s27, 4  ;;  %s2926_s17 = int_to_ptr.vmem [resolvable:$false] %s2925_s17 }
  0x56   : > { %s2927_s15 = scalar_lea.vmem %s2926_s17, 2048  ;;  %p2928_p7 = scmp.lt.s32.totalorder %s3344_s3, %s2926_s17 }
  0x57   : > { %p2923_p6 = pnand %p2921_p2, %p3991_p3  ;;  %p2929_p4 = scmp.lt.s32.totalorder %s2927_s15, %s2920_s14 }
  0x59   : > { %p2924_p8 = pneg %p2923_p6  ;;  %p2930_p5 = por %p2929_p4, %p2928_p7 }
  0x5b   : > { %p2931_p10 = pnand %p2930_p5, %p2924_p8 }
  0x5d   : > { %2934 = shalt.err (!%p2931_p10)
}
  0x5e   : > { %s4017_s28 = smov 4   ;;  %s4018_s26 = smov 64  }
  0x5f   : > { %2742 = dma.hbm_to_vmem [thread:$0]  (!%p3350_p0), %s3342_s5, 1024, %s3344_s3, %s3356_s1, %s4018_s26, %s4018_s26, %s4017_s28  }
  0x60   : > { %s3147_s2 = smov [#allocation8]   ;;  %s3148_s25 = smov [#allocation12]  }
  0x61   : > { %s464_s10 = sshll.u32 %s3147_s2, 4  ;;  %s486_s23 = sshll.u32 %s3148_s25, 4  ;;  %s465_s10 = int_to_ptr.vmem [resolvable:$true] %s464_s10  ;;  %s487_s23 = int_to_ptr.vmem [resolvable:$true] %s486_s23 }
  0x62   : > { %s2935_s17 = scalar_lea.hbm %s3963_s4, 1024 }
  0x63   : > { %p2936_p7 = scmp.ne.s32.totalorder %s3963_s4, %s2935_s17  ;;  %p2942_p1 = scmp.lt.u32.totalorder %s2935_s17, %s3963_s4 }
  0x65   : > { %p2938_p8 = pnand %p2936_p7, %p3295_p9 }
  0x67   : > { %p2939_p11 = pneg %p2938_p8 }
  0x69   : > { %p2944_p12 = pnand %p2942_p1, %p2939_p11 }
  0x6b   : > { %2947 = shalt.err (!%p2944_p12)
}
  0x6c   : > { %s2948_s3 = scalar_lea.vmem %s465_s10, 1024  ;;  %p2956_p4 = scmp.lt.s32.totalorder %s465_s10, %s465_s10 }
  0x6d   : > { %p2949_p13 = scmp.ne.s32.totalorder %s465_s10, %s2948_s3  ;;  %p2957_p5 = scmp.lt.s32.totalorder %s2948_s3, %s2948_s3 }
  0x6f   : > { %p2951_p2 = pnand %p2949_p13, %p3295_p9  ;;  %p2958_p10 = por %p2957_p5, %p2956_p4 }
  0x71   : > { %p2952_p6 = pneg %p2951_p2 }
  0x73   : > { %p2959_p3 = pnand %p2958_p10, %p2952_p6 }
  0x75   : > { %2962 = shalt.err (!%p2959_p3)
}
  0x76   : > { %p4019_p7 = scmp.ne.s32.totalorder %s4009_s24, 0  ;;  %s2963_s2 = scalar_lea.hbm %s3971_s12, 2048 }
  0x77   : > { %p2964_p8 = scmp.ne.s32.totalorder %s3971_s12, %s2963_s2  ;;  %p2970_p1 = scmp.lt.u32.totalorder %s2963_s2, %s3971_s12 }
  0x78   : > { %2732 = dma.hbm_to_vmem [thread:$0]  (!%p4019_p7), %s3963_s4, 1024, %s465_s10, [#allocation7], %s4018_s26, %s4018_s26, %s4017_s28  }
  0x79   : > { %p2966_p3 = pnand %p2964_p8, %p3295_p9 }
  0x7b   : > { %p2967_p11 = pneg %p2966_p3 }
  0x7d   : > { %p2972_p12 = pnand %p2970_p1, %p2967_p11 }
  0x7f   : > { %2975 = shalt.err (!%p2972_p12)
}
  0x80   : > { %s2976_s15 = scalar_lea.vmem %s487_s23, 2048  ;;  %p2984_p4 = scmp.lt.s32.totalorder %s487_s23, %s487_s23 }
  0x81   : > { %p2977_p13 = scmp.ne.s32.totalorder %s487_s23, %s2976_s15  ;;  %p2985_p5 = scmp.lt.s32.totalorder %s2976_s15, %s2976_s15 }
  0x83   : > { %p2979_p2 = pnand %p2977_p13, %p3295_p9  ;;  %p2986_p10 = por %p2985_p5, %p2984_p4 }
  0x85   : > { %p2980_p6 = pneg %p2979_p2 }
  0x87   : > { %p2987_p0 = pnand %p2986_p10, %p2980_p6 }
  0x89   : > { %2990 = shalt.err (!%p2987_p0)
}
  0x8a   : > { %s3149_s10 = smov 128   ;;  %s3150_s3 = smov 8  }
  0x8b   : > { %2735 = dma.hbm_to_vmem [thread:$0]  (!%p4019_p7), %s3971_s12, 2048, %s487_s23, [#allocation13], %s3149_s10, %s3149_s10, %s3150_s3  }
  0x8c   : > { %s3151_s22 = smov [#allocation3]   ;;  %p4020_p9 = scmp.eq.s32.totalorder %s3141_s18, 0 }
  0x8d   : > { %s518_s8 = sshll.u32 %s3151_s22, 4  ;;  %p4021_p8 = scmp.lt.s32.totalorder %s3141_s18, 4  ;;  %s519_s8 = int_to_ptr.vmem [resolvable:$true] %s518_s8 }
  0x8e   : > { %s2354_s2 = sshll.u32 %s4055_s29, 11  ;;  %s2991_s23 = scalar_lea.hbm %s3959_s0, 1024 }
  0x8f   : > { %p3433_p3 = pnand %p4021_p8, %p4020_p9  ;;  %s3441_s27 = scalar_lea.hbm %s3966_s7, %s2354_s2 }
  0x90   : > { %p2992_p0 = scmp.ne.s32.totalorder %s3959_s0, %s2991_s23  ;;  %p2998_p12 = scmp.lt.u32.totalorder %s2991_s23, %s3959_s0 }
  0x91   : > { %p2993_p7 = pneg %p3433_p3 }
  0x93   : > { %p2994_p11 = pnand %p2993_p7, %p2992_p0 }
  0x95   : > { %p2995_p1 = pneg %p2994_p11 }
  0x97   : > { %p3000_p13 = pnand %p2998_p12, %p2995_p1 }
  0x99   : > { %3003 = shalt.err (!%p3000_p13)
}
  0x9a   : > { %s3004_s29 = scalar_lea.vmem %s519_s8, 1024  ;;  %s3011_s2 = scalar_lea.vmem %s519_s8, 2048 }
  0x9b   : > { %p3005_p2 = scmp.ne.s32.totalorder %s519_s8, %s3004_s29  ;;  %p3012_p5 = scmp.lt.s32.totalorder %s519_s8, %s519_s8 }
  0x9c   : > { %p3013_p10 = scmp.lt.s32.totalorder %s3011_s2, %s3004_s29 }
  0x9d   : > { %p3007_p6 = pnand %p3005_p2, %p2993_p7 }
  0x9e   : > { %p3014_p9 = por %p3013_p10, %p3012_p5 }
  0x9f   : > { %p3008_p4 = pneg %p3007_p6 }
  0xa1   : > { %p3015_p8 = pnand %p3014_p9, %p3008_p4 }
  0xa3   : > { %3018 = shalt.err (!%p3015_p8)
}
  0xa4   : > { %2739 = dma.hbm_to_vmem [thread:$0]  (!%p3433_p3), %s3959_s0, 1024, %s519_s8, [#allocation4], %s4018_s26, %s4018_s26, %s4017_s28  }
  0xa5   : > { %s3019_s14 = scalar_lea.hbm %s3441_s27, 2048  ;;  %p4023_p7 = scmp.ne.s32.totalorder %s4016_s11, 0 }
  0xa6   : > { %p3020_p0 = scmp.ne.s32.totalorder %s3441_s27, %s3019_s14  ;;  %s3024_s23 = scalar_lea.hbm %s3966_s7, 6144 }
  0xa7   : > { %p4024_p11 = pneg %p4023_p7  ;;  %p3025_p13 = scmp.lt.u32.totalorder %s3441_s27, %s3966_s7 }
  0xa8   : > { %p3026_p2 = scmp.lt.u32.totalorder %s3024_s23, %s3019_s14  ;;  %p3028_p4 = scmp.lt.u32.totalorder %s3019_s14, %s3441_s27 }
  0xa9   : > { %p3022_p1 = pnand %p3020_p0, %p4024_p11 }
  0xaa   : > { %p3027_p6 = por %p3026_p2, %p3025_p13 }
  0xab   : > { %p3023_p12 = pneg %p3022_p1 }
  0xac   : > { %p3029_p3 = por %p3028_p4, %p3027_p6 }
  0xae   : > { %p3030_p5 = pnand %p3029_p3, %p3023_p12 }
  0xb0   : > { %3033 = shalt.err (!%p3030_p5)
}
  0xb1   : > { %s3034_s28 = scalar_lea.vmem %s3463_s13, 2048  ;;  %p4025_p9 = pmov %p4024_p11 }
  0xb2   : > { %p3035_p10 = scmp.ne.s32.totalorder %s3463_s13, %s3034_s28  ;;  %s3152_s26 = smov [#allocation11]  }
  0xb3   : > { %s3039_s8 = sshll.u32 %s3152_s26, 4  ;;  %s3040_s8 = int_to_ptr.vmem [resolvable:$false] %s3039_s8 }
  0xb4   : > { %p3037_p8 = pnand %p3035_p10, %p4025_p9  ;;  %s3041_s6 = scalar_lea.vmem %s3040_s8, 4096 }
  0xb5   : > { %p3042_p11 = scmp.lt.s32.totalorder %s3463_s13, %s3040_s8  ;;  %p3043_p1 = scmp.lt.s32.totalorder %s3041_s6, %s3034_s28 }
  0xb6   : > { %p3038_p0 = pneg %p3037_p8 }
  0xb7   : > { %p3044_p13 = por %p3043_p1, %p3042_p11 }
  0xb9   : > { %p3045_p2 = pnand %p3044_p13, %p3038_p0 }
  0xbb   : > { %3048 = shalt.err (!%p3045_p2)
}
  0xbc   : > { %2745 = dma.hbm_to_vmem [thread:$0]  (!%p4023_p7), %s3441_s27, 2048, %s3463_s13, %s3356_s1, %s3149_s10, %s3149_s10, %s3150_s3  }
  0xbd   : > { %p4026_p12 = scmp.ne.s32.totalorder %s4008_s21, 0 }
  0xbe   : > { %p4027_p6 = scmp.eq.s32.totalorder (!%p4026_p12), %s3263_s19, 0 }
  0xbf   : > { %602 = sbr.rel (%p4026_p12) target bundleno = 1713 (0x6b1), region = 76 }
  0xc6   : > { %3100 = dma.done.wait (%p4027_p6), [#allocation4], 1024   ;;  %p4028_p4 = pmov %p4027_p6 }
  0xc8   : > { %3102 = vsyncadd (%p4028_p4), [#allocation4], 4294966272  ;;  %p4029_p3 = pmov %p4028_p4 }
  0xca   : > { %3104 = dma.done.wait (%p4029_p3), [#allocation7], 2048   ;;  %p4030_p5 = pmov %p4029_p3 }
  0xcb   : > { %s621_s11 = sand.u32 1, %s3263_s19   ;;  %s623_s13 = sand.u32 1, %s3125_s30  }
  0xcc   : > { %3106 = vsyncadd (%p4030_p5), [#allocation7], 4294965248  ;;  %s2265_s1 = sshll.u32 %s623_s13, 6  ;;  %s622_s21 = scalar_lea.sflag [#allocation10], %s621_s11 }
  0xcd   : > { %s3504_s10 = scalar_lea.vmem [#allocation9], %s2265_s1  ;;  %p4031_p7 = scmp.ne.s32.totalorder %s4007_s20, 0 }
  0xcf   : > { %3108 = dma.done.wait (%p4031_p7), %s622_s21, 3072  }
  0xd0   : > { %3110 = vsyncadd (%p4031_p7), %s622_s21, 4294964224  ;;  %s2266_s3 = sshll.u32 %s623_s13, 7  ;;  %p4032_p10 = pmov %p4029_p3 }
  0xd1   : > { %s3510_s27 = scalar_lea.vmem [#allocation11], %s2266_s3 }
  0xd2   : > { %3112 = dma.done.wait (%p4032_p10), [#allocation13], 2048   ;;  %p4033_p9 = pmov %p4029_p3 }
  0xd3   : > { %s2268_s22 = sadd.s32 4294967295, %s3133_s16  ;;  %p741_p8 = scmp.lt.s32.totalorder %s3133_s16, 0 }
  0xd4   : > { %3114 = vsyncadd (%p4033_p9), [#allocation13], 4294965248  ;;  %p723_p0 = scmp.gt.s32.totalorder %s2268_s22, 0  ;;  %p2269_p11 = scmp.lt.s32.totalorder %s2268_s22, 2 }
  0xd5   : > { %s742_s20 = ssub.s32 0, %s3133_s16  ;;  %s753_s29 = sadd.s32 1, %s3133_s16 }
  0xd6   : > { %s4059_s22 = smov (!%p723_p0, %s2268_s22), 0  ;;  %s2280_s2 = smin.u32 %s3133_s16, %s742_s20 }
  0xd7   : > { %p754_p1 = scmp.lt.s32.totalorder %s753_s29, 0  ;;  %s4061_s22 = smov (!%p2269_p11, %s4059_s22), 2 }
  0xd8   : > { %s744_s25 = sand.u32 1, %s2280_s2   ;;  %s755_s24 = ssub.s32 0, %s753_s29 }
  0xd9   : > { %s4034_s17 = sld [smem:[#allocation29_spill]]  ;;  %s4035_s28 = sld [smem:[#allocation30_spill]] }
  0xda   : > { %s745_s8 = ssub.s32 0, %s744_s25  ;;  %s2283_s6 = smin.u32 %s755_s24, %s753_s29 }
  0xdb   : > { %s4063_s8 = smov (!%p741_p8, %s745_s8), %s744_s25  ;;  %s757_s11 = sand.u32 1, %s2283_s6  }
  0xdc   : > { %p771_p13 = scmp.eq.s32.totalorder %s3133_s16, 0  ;;  %p2282_p2 = scmp.lt.s32.totalorder %s4063_s8, 0 }
  0xdd   : > { %s751_s13 = sadd.s32 2, %s4063_s8  ;;  %s758_s1 = ssub.s32 0, %s757_s11  ;;  %v3153_v0 = vmov (%p771_p13), 0.0  }
  0xde   : > { %s4065_s13 = smov (!%p2282_p2, %s751_s13), %s4063_s8  ;;  %s4067_s1 = smov (!%p754_p1, %s758_s1), %s757_s11 }
  0xdf   : > { %s727_s23 = scalar_lea.vmem %s4034_s17, %s4061_s22  ;;  %s736_s26 = scalar_lea.vmem %s4035_s28, %s4061_s22  ;;  %777 = vst [vmem:[#allocation14] sm:$0xff] (%p771_p13), %v3153_v0 }
  0xe0   : > { %s2286_s21 = sshll.u32 %s4065_s13, 7  ;;  %p2285_p12 = scmp.lt.s32.totalorder %s4067_s1, 0 }
  0xe1   : > { %s764_s3 = sadd.s32 2, %s4067_s1  ;;  %776 = sbr.rel (!%p771_p13) target bundleno = 232 (0xe8), region = 104 }
  0xe2   : > { %s4069_s3 = smov (!%p2285_p12, %s764_s3), %s4067_s1 }
  0xe3   : > { %s2287_s20 = sshll.u32 %s4069_s3, 7 }
  0xe8 PF: > { %p2289_p6 = scmp.ne.s32.totalorder %s3133_s16, 0 }
  0xe9   : > { %v2819_v1 = vld [vmem:[#allocation8] sm:$0xff] (!%p2289_p6)   ;;  %v2820_v2 = vld [vmem:[#allocation8 + $0x8] sm:$0xff] (!%p2289_p6)   ;;  %v2821_v3 = vld [vmem:[#allocation8 + $0x10] sm:$0xff] (!%p2289_p6)   ;;  %s1021_s29 = sshra.s32 (!%p2289_p6), %s2286_s21, 4  ;;  %s4036_s24 = sld [smem:[#allocation27_spill]] (!%p2289_p6) }
  0xea   : > { %780 = sbr.rel (%p2289_p6) target bundleno = 494 (0x1ee), region = 108  ;;  %2452 = vmatprep.subr.bf16.mxu0 (!%p2289_p6), %v2819_v1  ;;  %2686 = vmatprep.subr.bf16.mxu1 (!%p2289_p6), %v2819_v1  ;;  %v2822_v4 = vld [vmem:[#allocation8 + $0x18] sm:$0xff] (!%p2289_p6)   ;;  %v2827_v5 = vld [vmem:[#allocation3] sm:$0xff] (!%p2289_p6)   ;;  %v2824_v8 = vld [vmem:[#allocation8 + $0x28] sm:$0xff] (!%p2289_p6)   ;;  %s2307_s14 = sshll.u32 (!%p2289_p6), %s1021_s29, 3 }
  0xeb   : > { %2453 = vmatpush3.bf16.msra.mxu0 (!%p2289_p6), %v2819_v1  ;;  %2694 = vmatpush3.bf16.msra.mxu1 (!%p2289_p6), %v2819_v1  ;;  %v2828_v6 = vld [vmem:[#allocation3 + $0x20] sm:$0xff] (!%p2289_p6)   ;;  %v2825_v9 = vld [vmem:[#allocation8 + $0x30] sm:$0xff] (!%p2289_p6)   ;;  %v2826_v10 = vld [vmem:[#allocation8 + $0x38] sm:$0xff] (!%p2289_p6)   ;;  %s1024_s9 = scalar_lea.vmem (!%p2289_p6), [#allocation2], %s2307_s14 }
  0xec   : > { %2454 = vmatprep.subr.bf16.mxu0 (!%p2289_p6), %v2820_v2  ;;  %2687 = vmatprep.subr.bf16.mxu1 (!%p2289_p6), %v2820_v2  ;;  %v2823_v7 = vld [vmem:[#allocation8 + $0x20] sm:$0xff] (!%p2289_p6)   ;;  %v2829_v11 = vld [vmem:[#allocation3 + $0x8] sm:$0xff] (!%p2289_p6)   ;;  %v2831_v13 = vld [vmem:[#allocation3 + $0x10] sm:$0xff] (!%p2289_p6)  }
  0xed   : > { %2468 = vmatprep.mubr.bf16.mxu0 (!%p2289_p6), %v2827_v5  ;;  %2476 = vmatprep.mubr.bf16.mxu1 (!%p2289_p6), %v2828_v6  ;;  %v2830_v12 = vld [vmem:[#allocation3 + $0x28] sm:$0xff] (!%p2289_p6)   ;;  %v2832_v14 = vld [vmem:[#allocation3 + $0x30] sm:$0xff] (!%p2289_p6)   ;;  %v2833_v15 = vld [vmem:[#allocation3 + $0x18] sm:$0xff] (!%p2289_p6)  }
  0xee   : > { %v2834_v16 = vld [vmem:[#allocation3 + $0x38] sm:$0xff] (!%p2289_p6)  }
  0xef   : > { %2455 = vmatpush3.bf16.msra.mxu0 (!%p2289_p6), %v2820_v2  ;;  %2695 = vmatpush3.bf16.msra.mxu1 (!%p2289_p6), %v2820_v2  ;;  %v2290_v18 = vld [vmem:[%s4036_s24] ss:$0 sm:$0xff] (!%p2289_p6) }
  0xf0   : > { %2456 = vmatprep.subr.bf16.mxu0 (!%p2289_p6), %v2821_v3  ;;  %2688 = vmatprep.subr.bf16.mxu1 (!%p2289_p6), %v2821_v3 }
  0xf3   : > { %2457 = vmatpush3.bf16.msra.mxu0 %v2821_v3  ;;  %2696 = vmatpush3.bf16.msra.mxu1 %v2821_v3 }
  0xf4   : > { %2458 = vmatprep.subr.bf16.mxu0 %v2822_v4  ;;  %2689 = vmatprep.subr.bf16.mxu1 %v2822_v4 }
  0xf7   : > { %2459 = vmatpush3.bf16.msra.mxu0 %v2822_v4  ;;  %2697 = vmatpush3.bf16.msra.mxu1 %v2822_v4 }
  0xf8   : > { %2460 = vmatprep.subr.bf16.mxu0 %v2823_v7  ;;  %2690 = vmatprep.subr.bf16.mxu1 %v2823_v7 }
  0xfb   : > { %2461 = vmatpush3.bf16.msra.mxu0 %v2823_v7  ;;  %2698 = vmatpush3.bf16.msra.mxu1 %v2823_v7 }
  0xfc   : > { %2462 = vmatprep.subr.bf16.mxu0 %v2824_v8  ;;  %2691 = vmatprep.subr.bf16.mxu1 %v2824_v8 }
  0xff   : > { %2463 = vmatpush3.bf16.msra.mxu0 %v2824_v8  ;;  %2699 = vmatpush3.bf16.msra.mxu1 %v2824_v8 }
 0x100   : > { %2464 = vmatprep.subr.bf16.mxu0 %v2825_v9  ;;  %2692 = vmatprep.subr.bf16.mxu1 %v2825_v9 }
 0x103   : > { %2465 = vmatpush3.bf16.msra.mxu0 %v2825_v9  ;;  %2700 = vmatpush3.bf16.msra.mxu1 %v2825_v9 }
 0x104   : > { %2466 = vmatprep.subr.bf16.mxu0 %v2826_v10  ;;  %2693 = vmatprep.subr.bf16.mxu1 %v2826_v10 }
 0x107   : > { %2467 = vmatpush3.bf16.msra.mxu0 %v2826_v10  ;;  %2701 = vmatpush3.bf16.msra.mxu1 %v2826_v10 }
 0x10a   : > { %2469 = vmatmul.mubr.bf16.vlgmr.msra.gmra.mrb[0].mxu0 %v2829_v11  ;;  %2477 = vmatmul.mubr.bf16.vlgmr.msra.gmra.mrb[0].mxu1 %v2830_v12 }
 0x10b   : > { %2472 = vmatprep.mubr.bf16.mxu0 %v2831_v13  ;;  %2480 = vmatprep.mubr.bf16.mxu1 %v2832_v14 }
 0x112   : > { %2473 = vmatmul.mubr.bf16.gmra.mrb[4].mxu0 %v2833_v15  ;;  %2481 = vmatmul.mubr.bf16.gmra.mrb[4].mxu1 %v2834_v16 }
 0x1dd   : > { %v2470_v17 = vpop.f32.mrb[0].mxu0  ;;  %v2478_v19 = vpop.f32.mrb[0].mxu1 }
 0x1de   : > { %v950_v20 = vpop.f32.mrb[1].mxu0  ;;  %v982_v21 = vpop.f32.mrb[1].mxu1  ;;  %v959_v24 = vadd.f32 %v2470_v17, %v2290_v18  ;;  %v991_v25 = vadd.f32 %v2478_v19, %v2290_v18 }
 0x1df   : > { %v2471_v22 = vpop.f32.mrb[2].mxu0  ;;  %v2479_v23 = vpop.f32.mrb[2].mxu1  ;;  %v951_v30 = vadd.f32 %v2290_v18, %v950_v20  ;;  %v983_v31 = vadd.f32 %v2290_v18, %v982_v21 }
 0x1e0   : > { %v962_v26 = vadd.f32 %v2471_v22, %v2290_v18  ;;  %v994_v27 = vadd.f32 %v2479_v23, %v2290_v18  ;;  %v953_v28 = vpop.f32.mrb[3].mxu0  ;;  %v985_v29 = vpop.f32.mrb[3].mxu1 }
 0x1e1   : > { %v954_v32 = vadd.f32 %v2290_v18, %v953_v28  ;;  %v986_v33 = vadd.f32 %v2290_v18, %v985_v29 }
 0x1e2   : > { %v1014_v34 = vpack.c.bf16 %v962_v26, %v959_v24  ;;  %v1018_v35 = vpack.c.bf16 %v994_v27, %v991_v25 }
 0x1e3   : > { %v1013_v36 = vpack.c.bf16 %v954_v32, %v951_v30  ;;  %v1017_v37 = vpack.c.bf16 %v986_v33, %v983_v31 }
 0x1e4   : > { %1026 = vst [vmem:[%s1024_s9 + $0x8] sm:$0xff] %v1014_v34  ;;  %1030 = vst [vmem:[%s1024_s9 + $0x28] sm:$0xff] %v1018_v35 }
 0x1e5   : > { %1025 = vst [vmem:[%s1024_s9] sm:$0xff] %v1013_v36  ;;  %1029 = vst [vmem:[%s1024_s9 + $0x20] sm:$0xff] %v1017_v37  ;;  %v2474_v38 = vpop.f32.mrb[4].mxu0  ;;  %v2482_v39 = vpop.f32.mrb[4].mxu1 }
 0x1e6   : > { %v966_v40 = vpop.f32.mrb[5].mxu0  ;;  %v998_v41 = vpop.f32.mrb[5].mxu1  ;;  %v975_v44 = vadd.f32 %v2474_v38, %v2290_v18  ;;  %v1007_v45 = vadd.f32 %v2482_v39, %v2290_v18 }
 0x1e7   : > { %v2475_v42 = vpop.f32.mrb[6].mxu0  ;;  %v2483_v43 = vpop.f32.mrb[6].mxu1  ;;  %v967_v50 = vadd.f32 %v2290_v18, %v966_v40  ;;  %v999_v51 = vadd.f32 %v2290_v18, %v998_v41 }
 0x1e8   : > { %v978_v46 = vadd.f32 %v2475_v42, %v2290_v18  ;;  %v1010_v47 = vadd.f32 %v2483_v43, %v2290_v18  ;;  %v969_v48 = vpop.f32.mrb[7].mxu0  ;;  %v1001_v49 = vpop.f32.mrb[7].mxu1 }
 0x1e9   : > { %v970_v52 = vadd.f32 %v2290_v18, %v969_v48  ;;  %v1002_v53 = vadd.f32 %v2290_v18, %v1001_v49 }
 0x1ea   : > { %v1016_v54 = vpack.c.bf16 %v978_v46, %v975_v44  ;;  %v1020_v55 = vpack.c.bf16 %v1010_v47, %v1007_v45 }
 0x1eb   : > { %v1015_v56 = vpack.c.bf16 %v970_v52, %v967_v50  ;;  %v1019_v57 = vpack.c.bf16 %v1002_v53, %v999_v51 }
 0x1ec   : > { %1028 = vst [vmem:[%s1024_s9 + $0x18] sm:$0xff] %v1016_v54  ;;  %1032 = vst [vmem:[%s1024_s9 + $0x38] sm:$0xff] %v1020_v55 }
 0x1ed   : > { %1027 = vst [vmem:[%s1024_s9 + $0x10] sm:$0xff] %v1015_v56  ;;  %1031 = vst [vmem:[%s1024_s9 + $0x30] sm:$0xff] %v1019_v57 }
 0x1ee PF: > { %p2308_p4 = scmp.le.s32.totalorder %s3133_s16, 0 }
 0x1ef   : > { %s1037_s17 = sshra.s32 (!%p2308_p4), %s2287_s20, 4  ;;  %v2837_v58 = vld [vmem:[#allocation6] sm:$0xff] (!%p2308_p4)   ;;  %v3154_v61 = vmov (!%p2308_p4), 0   ;;  %v2848_v2 = vld [vmem:[%s3510_s27 + $0x14] ss:$8 sps:$4 sm:$0xff] (!%p2308_p4)   ;;  %v2838_v18 = vld [vmem:[#allocation6 + $0x8] sm:$0xff] (!%p2308_p4)  }
 0x1f0   : > { %1036 = sbr.rel (%p2308_p4) target bundleno = 1001 (0x3e9), region = 112  ;;  %s2309_s15 = sshll.u32 (!%p2308_p4), %s1037_s17, 3  ;;  %2500 = vmatprep.mubr.bf16.mxu0 (!%p2308_p4), %v2837_v58  ;;  %1378 = vmatprep.mubr.bf16.mxu1 (!%p2308_p4), %v3154_v61  ;;  %v2845_v0 = vld [vmem:[%s3510_s27 + $0x4] ss:$8 sps:$4 sm:$0xff] (!%p2308_p4)   ;;  %v2847_v1 = vld [vmem:[%s3510_s27] ss:$8 sps:$4 sm:$0xff] (!%p2308_p4)  }
 0x1f1   : > { %s3550_s5 = scalar_lea.vmem (!%p2308_p4), [#allocation2], %s2309_s15  ;;  %2835 = vset.pattern.permute.xlu0 (!%p2308_p4), %v3154_v61  ;;  %2836 = vset.pattern.permute.xlu1 (!%p2308_p4), %v3154_v61  ;;  %v2850_v3 = vld [vmem:[%s3510_s27 + $0x10] ss:$8 sps:$4 sm:$0xff] (!%p2308_p4)   ;;  %v2851_v5 = vld [vmem:[%s3510_s27 + $0x24] ss:$8 sps:$4 sm:$0xff] (!%p2308_p4)   ;;  %s4037_s8 = sld [smem:[#allocation25_spill]] (!%p2308_p4) }
 0x1f2   : > { %1346 = vmatprep.subr.bf16.mxu1 (!%p2308_p4), %v2845_v0  ;;  %v2853_v6 = vld [vmem:[%s3510_s27 + $0x20] ss:$8 sps:$4 sm:$0xff] (!%p2308_p4)   ;;  %v2854_v8 = vld [vmem:[%s3510_s27 + $0x34] ss:$8 sps:$4 sm:$0xff] (!%p2308_p4)   ;;  %v2856_v10 = vld [vmem:[%s3510_s27 + $0x30] ss:$8 sps:$4 sm:$0xff] (!%p2308_p4)  }
 0x1f3   : > { %1347 = vmatpush1.bf16.msra.mxu1 (!%p2308_p4), %v2847_v1  ;;  %v2857_v11 = vld [vmem:[%s3510_s27 + $0x44] ss:$8 sps:$4 sm:$0xff] (!%p2308_p4)   ;;  %v2859_v13 = vld [vmem:[%s3510_s27 + $0x40] ss:$8 sps:$4 sm:$0xff] (!%p2308_p4)   ;;  %v2860_v14 = vld [vmem:[%s3510_s27 + $0x54] ss:$8 sps:$4 sm:$0xff] (!%p2308_p4)  }
 0x1f4   : > { %v3553_v59 = vld [vmem:[%s3550_s5] sm:$0xff] (!%p2308_p4)  ;;  %v3556_v60 = vld [vmem:[%s3550_s5 + $0x8] sm:$0xff] (!%p2308_p4)  ;;  %v3565_v62 = vld [vmem:[%s3550_s5 + $0x10] sm:$0xff] (!%p2308_p4)  ;;  %1348 = vmatprep.subr.bf16.mxu1 (!%p2308_p4), %v2848_v2  ;;  %s3767_s11 = sshra.s32 (!%p2308_p4), %s2286_s21, 4 }
 0x1f5   : > { %2484 = vmatprep.subr.bf16.mxu0 (!%p2308_p4), %v3553_v59  ;;  %v3570_v63 = vld [vmem:[%s3550_s5 + $0x18] sm:$0xff] (!%p2308_p4)  ;;  %v3579_v4 = vld [vmem:[%s3550_s5 + $0x20] sm:$0xff] (!%p2308_p4)  ;;  %v3586_v7 = vld [vmem:[%s3550_s5 + $0x28] sm:$0xff] (!%p2308_p4)  ;;  %s2345_s22 = sshll.u32 (!%p2308_p4), %s3767_s11, 3 }
 0x1f6   : > { %2485 = vmatpush3.bf16.msra.mxu0 (!%p2308_p4), %v3553_v59  ;;  %v3591_v9 = vld [vmem:[%s3550_s5 + $0x30] sm:$0xff] (!%p2308_p4)  ;;  %v3598_v12 = vld [vmem:[%s3550_s5 + $0x38] sm:$0xff] (!%p2308_p4)  ;;  %v2869_v16 = vld [vmem:[%s3504_s10] sm:$0xff] (!%p2308_p4)  }
 0x1f7   : > { %2486 = vmatprep.subr.bf16.mxu0 %v3556_v60  ;;  %1349 = vmatpush1.bf16.msra.mxu1 %v2850_v3  ;;  %v2862_v15 = vld [vmem:[%s3510_s27 + $0x50] ss:$8 sps:$4 sm:$0xff]   ;;  %v2863_v17 = vld [vmem:[%s3510_s27 + $0x64] ss:$8 sps:$4 sm:$0xff]   ;;  %v2865_v20 = vld [vmem:[%s3510_s27 + $0x60] ss:$8 sps:$4 sm:$0xff]  }
 0x1f8   : > { %1350 = vmatprep.subr.bf16.mxu1 %v2851_v5  ;;  %v2839_v19 = vld [vmem:[#allocation6 + $0x10] sm:$0xff]   ;;  %v2870_v21 = vld [vmem:[%s3504_s10 + $0x8] sm:$0xff]   ;;  %v2840_v25 = vld [vmem:[#allocation6 + $0x18] sm:$0xff]  }
 0x1f9   : > { %v2866_v22 = vld [vmem:[%s3510_s27 + $0x74] ss:$8 sps:$4 sm:$0xff]   ;;  %v2868_v23 = vld [vmem:[%s3510_s27 + $0x70] ss:$8 sps:$4 sm:$0xff]   ;;  %v2841_v26 = vld [vmem:[#allocation6 + $0x20] sm:$0xff]  }
 0x1fa   : > { %2487 = vmatpush3.bf16.msra.mxu0 %v3556_v60  ;;  %v2871_v24 = vld [vmem:[%s3504_s10 + $0x10] sm:$0xff]   ;;  %v2872_v27 = vld [vmem:[%s3504_s10 + $0x18] sm:$0xff]   ;;  %v2873_v28 = vld [vmem:[%s3504_s10 + $0x20] sm:$0xff]  }
 0x1fb   : > { %2488 = vmatprep.subr.bf16.mxu0 %v3565_v62  ;;  %1351 = vmatpush1.bf16.msra.mxu1 %v2853_v6  ;;  %v2842_v29 = vld [vmem:[#allocation6 + $0x28] sm:$0xff]   ;;  %v2843_v30 = vld [vmem:[#allocation6 + $0x30] sm:$0xff]   ;;  %v2844_v33 = vld [vmem:[#allocation6 + $0x38] sm:$0xff]  }
 0x1fc   : > { %1352 = vmatprep.subr.bf16.mxu1 %v2854_v8  ;;  %v2874_v31 = vld [vmem:[%s3504_s10 + $0x28] sm:$0xff]   ;;  %v2875_v32 = vld [vmem:[%s3504_s10 + $0x30] sm:$0xff]   ;;  %v2876_v34 = vld [vmem:[%s3504_s10 + $0x38] sm:$0xff]  }
 0x1fd   : > { %v1459_v35 = vld [vmem:[%s4037_s8] sm:$0xff]  ;;  %v1461_v36 = vld [vmem:[%s4037_s8 + $0x10] sm:$0xff]  ;;  %v1460_v37 = vld [vmem:[%s4037_s8 + $0x8] sm:$0xff] }
 0x1fe   : > { %2489 = vmatpush3.bf16.msra.mxu0 %v3565_v62  ;;  %1500 = vperm.xlu0 %2835, %v1459_v35   ;;  %v1462_v38 = vld [vmem:[%s4037_s8 + $0x18] sm:$0xff]  ;;  %v1464_v39 = vld [vmem:[%s4037_s8 + $0x28] sm:$0xff]  ;;  %v1463_v40 = vld [vmem:[%s4037_s8 + $0x20] sm:$0xff] }
 0x1ff   : > { %2490 = vmatprep.subr.bf16.mxu0 %v3570_v63  ;;  %1353 = vmatpush1.bf16.msra.mxu1 %v2856_v10  ;;  %v1466_v41 = vld [vmem:[%s4037_s8 + $0x38] sm:$0xff]  ;;  %v1465_v42 = vld [vmem:[%s4037_s8 + $0x30] sm:$0xff]  ;;  %v1468_v43 = vld [vmem:[%s4037_s8 + $0x48] sm:$0xff] }
 0x200   : > { %1354 = vmatprep.subr.bf16.mxu1 %v2857_v11  ;;  %1510 = vperm.xlu1 %2836, %v1461_v36   ;;  %v1467_v44 = vld [vmem:[%s4037_s8 + $0x40] sm:$0xff]  ;;  %v1470_v45 = vld [vmem:[%s4037_s8 + $0x58] sm:$0xff]  ;;  %v1469_v46 = vld [vmem:[%s4037_s8 + $0x50] sm:$0xff] }
 0x201   : > { %v1472_v47 = vld [vmem:[%s4037_s8 + $0x68] sm:$0xff]  ;;  %v1471_v48 = vld [vmem:[%s4037_s8 + $0x60] sm:$0xff]  ;;  %v1474_v49 = vld [vmem:[%s4037_s8 + $0x78] sm:$0xff] }
 0x202   : > { %2491 = vmatpush3.bf16.msra.mxu0 %v3570_v63  ;;  %1505 = vperm.xlu0 %2835, %v1460_v37   ;;  %v1473_v50 = vld [vmem:[%s4037_s8 + $0x70] sm:$0xff] }
 0x203   : > { %2492 = vmatprep.subr.bf16.mxu0 %v3579_v4  ;;  %1355 = vmatpush1.bf16.msra.mxu1 %v2859_v13 }
 0x204   : > { %1356 = vmatprep.subr.bf16.mxu1 %v2860_v14  ;;  %1515 = vperm.xlu1 %2836, %v1462_v38  }
 0x206   : > { %2493 = vmatpush3.bf16.msra.mxu0 %v3579_v4  ;;  %1520 = vperm.xlu0 %2835, %v1463_v40  }
 0x207   : > { %2494 = vmatprep.subr.bf16.mxu0 %v3586_v7  ;;  %1357 = vmatpush1.bf16.msra.mxu1 %v2862_v15 }
 0x208   : > { %1358 = vmatprep.subr.bf16.mxu1 %v2863_v17  ;;  %1525 = vperm.xlu1 %2836, %v1464_v39  }
 0x20a   : > { %2495 = vmatpush3.bf16.msra.mxu0 %v3586_v7  ;;  %1530 = vperm.xlu0 %2835, %v1465_v42  }
 0x20b   : > { %2496 = vmatprep.subr.bf16.mxu0 %v3591_v9  ;;  %1359 = vmatpush1.bf16.msra.mxu1 %v2865_v20 }
 0x20c   : > { %1360 = vmatprep.subr.bf16.mxu1 %v2866_v22  ;;  %1535 = vperm.xlu1 %2836, %v1466_v41  }
 0x20e   : > { %2497 = vmatpush3.bf16.msra.mxu0 %v3591_v9  ;;  %1540 = vperm.xlu0 %2835, %v1467_v44  }
 0x20f   : > { %2498 = vmatprep.subr.bf16.mxu0 %v3598_v12  ;;  %1361 = vmatpush1.bf16.msra.mxu1 %v2868_v23 }
 0x210   : > { %1545 = vperm.xlu1 %2836, %v1468_v43  }
 0x212   : > { %2499 = vmatpush3.bf16.msra.mxu0 %v3598_v12  ;;  %1379 = vmatmul.mubr.bf16.vlgmr.msra.gmra.mrb[0].mxu1 %v3553_v59 }
 0x213   : > { %2516 = vmatprep.subr.bf16.mxu0 %v2869_v16  ;;  %1388 = vmatprep.mubr.bf16.mxu1 %v3154_v61 }
 0x214   : > { %1555 = vperm.xlu1 %2836, %v1470_v45   ;;  %1550 = vperm.xlu0 %2835, %v1469_v46  }
 0x215   : > { %2501 = vmatmul.mubr.bf16.vlgmr.msra.gmra.mrb[0].mxu0 %v2838_v18 }
 0x216   : > { %2504 = vmatprep.mubr.bf16.mxu0 %v2839_v19  ;;  %2517 = vmatpush3.bf16.msra.mxu0 %v2869_v16 }
 0x217   : > { %2518 = vmatprep.subr.bf16.mxu0 %v2870_v21 }
 0x218   : > { %1565 = vperm.xlu1 %2836, %v1472_v47   ;;  %1560 = vperm.xlu0 %2835, %v1471_v48  }
 0x21a   : > { %2519 = vmatpush3.bf16.msra.mxu0 %v2870_v21  ;;  %1389 = vmatmul.mubr.bf16.gmra.mrb[4].mxu1 %v3556_v60 }
 0x21b   : > { %2520 = vmatprep.subr.bf16.mxu0 %v2871_v24  ;;  %1398 = vmatprep.mubr.bf16.mxu1 %v3154_v61 }
 0x21c   : > { %1575 = vperm.xlu1 %2836, %v1474_v49   ;;  %1570 = vperm.xlu0 %2835, %v1473_v50   ;;  %v3745_v49 = vld [vmem:[%s727_s23] ss:$0 sm:$0xff] }
 0x21d   : > { %2505 = vmatmul.mubr.bf16.gmra.mrb[4].mxu0 %v2840_v25 }
 0x21e   : > { %2508 = vmatprep.mubr.bf16.mxu0 %v2841_v26  ;;  %2521 = vmatpush3.bf16.msra.mxu0 %v2871_v24 }
 0x21f   : > { %2522 = vmatprep.subr.bf16.mxu0 %v2872_v27 }
 0x222   : > { %2523 = vmatpush3.bf16.msra.mxu0 %v2872_v27  ;;  %1399 = vmatmul.mubr.bf16.gmra.mrb[8].mxu1 %v3565_v62 }
 0x223   : > { %2524 = vmatprep.subr.bf16.mxu0 %v2873_v28  ;;  %1408 = vmatprep.mubr.bf16.mxu1 %v3154_v61 }
 0x225   : > { %2509 = vmatmul.mubr.bf16.gmra.mrb[8].mxu0 %v2842_v29 }
 0x226   : > { %2512 = vmatprep.mubr.bf16.mxu0 %v2843_v30  ;;  %2525 = vmatpush3.bf16.msra.mxu0 %v2873_v28 }
 0x227   : > { %2526 = vmatprep.subr.bf16.mxu0 %v2874_v31 }
 0x22a   : > { %2527 = vmatpush3.bf16.msra.mxu0 %v2874_v31  ;;  %1409 = vmatmul.mubr.bf16.gmra.mrb[12].mxu1 %v3570_v63 }
 0x22b   : > { %2528 = vmatprep.subr.bf16.mxu0 %v2875_v32  ;;  %1418 = vmatprep.mubr.bf16.mxu1 %v3154_v61 }
 0x22d   : > { %2513 = vmatmul.mubr.bf16.gmra.mrb[12].mxu0 %v2844_v33 }
 0x22e   : > { %2529 = vmatpush3.bf16.msra.mxu0 %v2875_v32 }
 0x22f   : > { %2530 = vmatprep.subr.bf16.mxu0 %v2876_v34 }
 0x232   : > { %1419 = vmatmul.mubr.bf16.gmra.mrb[16].mxu1 %v3579_v4  ;;  %2531 = vmatpush3.bf16.msra.mxu0 %v2876_v34 }
 0x233   : > { %1428 = vmatprep.mubr.bf16.mxu1 %v3154_v61 }
 0x23a   : > { %1429 = vmatmul.mubr.bf16.gmra.mrb[20].mxu1 %v3586_v7 }
 0x23b   : > { %1438 = vmatprep.mubr.bf16.mxu1 %v3154_v61 }
 0x242   : > { %1439 = vmatmul.mubr.bf16.gmra.mrb[24].mxu1 %v3591_v9 }
 0x243   : > { %1448 = vmatprep.mubr.bf16.mxu1 %v3154_v61 }
 0x24a   : > { %1449 = vmatmul.mubr.bf16.gmra.mrb[28].mxu1 %v3598_v12 }
 0x27d   : > { %v1501_v43 = vpop.permute.xlu0 %1500 }
 0x27f   : > { %v1511_v44 = vpop.permute.xlu1 %1510 }
 0x281   : > { %v1506_v45 = vpop.permute.xlu0 %1505 }
 0x283   : > { %v1516_v46 = vpop.permute.xlu1 %1515 }
 0x285   : > { %v1521_v47 = vpop.permute.xlu0 %1520 }
 0x287   : > { %v1526_v48 = vpop.permute.xlu1 %1525 }
 0x2e5   : > { %v3682_v59 = vpop.f32.mrb[0].mxu1 }
 0x2e6   : > { %v3684_v61 = vpop.f32.mrb[1].mxu1 }
 0x2e7   : > { %v3686_v0 = vpop.f32.mrb[2].mxu1 }
 0x2e8   : > { %v2502_v51 = vpop.f32.mrb[0].mxu0  ;;  %v3688_v2 = vpop.f32.mrb[3].mxu1 }
 0x2e9   : > { %v1163_v52 = vpop.f32.mrb[1].mxu0 }
 0x2ea   : > { %v2503_v53 = vpop.f32.mrb[2].mxu0 }
 0x2eb   : > { %v1227_v54 = vpack.c.bf16 %v2503_v53, %v2502_v51  ;;  %v1166_v55 = vpop.f32.mrb[3].mxu0  ;;  %v1482_v51 = vsub.f32 %v3745_v49, %v3682_v59  ;;  %v3758_v59 = vld [vmem:[%s736_s26] ss:$0 sm:$0xff]  ;;  %s3788_s26 = scalar_lea.vmem [#allocation2], %s2345_s22 }
 0x2ec   : > { %v1226_v56 = vpack.c.bf16 %v1166_v55, %v1163_v52  ;;  %v1531_v52 = vpop.permute.xlu0 %1530  ;;  %v1536_v55 = vpop.permute.xlu1 %1535 }
 0x2ed   : > { %v1390_v5 = vpop.f32.mrb[4].mxu1 }
 0x2ee   : > { %2532 = vmatprep.mubr.bf16.mxu0 %v1226_v56  ;;  %v3690_v7 = vpop.f32.mrb[5].mxu1  ;;  %v1484_v50 = vsub.f32 %v3745_v49, %v1390_v5 }
 0x2ef   : > { %2533 = vmatmul.mubr.bf16.vlgmr.msra.gmra.mrb[16].mxu0 %v1227_v54  ;;  %v1394_v10 = vpop.f32.mrb[6].mxu1  ;;  %v1483_v54 = vsub.f32 %v3745_v49, %v3686_v0 }
 0x2f0   : > { %v2506_v57 = vpop.f32.mrb[4].mxu0  ;;  %v3692_v12 = vpop.f32.mrb[7].mxu1  ;;  %v1485_v53 = vsub.f32 %v3745_v49, %v1394_v10  ;;  %v1580_v56 = vmul.f32 %v1511_v44, %v1484_v50 }
 0x2f1   : > { %v1179_v58 = vpop.f32.mrb[5].mxu0 }
 0x2f2   : > { %v2507_v60 = vpop.f32.mrb[6].mxu0 }
 0x2f3   : > { %v1229_v62 = vpack.c.bf16 %v2507_v60, %v2506_v57  ;;  %v1182_v63 = vpop.f32.mrb[7].mxu0  ;;  %v1578_v57 = vmul.f32 %v1501_v43, %v1482_v51  ;;  %v1581_v60 = vmul.f32 %v1516_v46, %v1485_v53 }
 0x2f4   : > { %v1228_v1 = vpack.c.bf16 %v1182_v63, %v1179_v58 }
 0x2f5   : > { %v3694_v15 = vpop.f32.mrb[8].mxu1 }
 0x2f6   : > { %2536 = vmatprep.mubr.bf16.mxu0 %v1228_v1  ;;  %v3696_v17 = vpop.f32.mrb[9].mxu1  ;;  %v1579_v1 = vmul.f32 %v1506_v45, %v1483_v54  ;;  %v1486_v10 = vsub.f32 %v3745_v49, %v3694_v15 }
 0x2f7   : > { %2537 = vmatmul.mubr.bf16.gmra.mrb[20].mxu0 %v1229_v62  ;;  %v3698_v20 = vpop.f32.mrb[10].mxu1 }
 0x2f8   : > { %v2510_v3 = vpop.f32.mrb[8].mxu0  ;;  %v3700_v22 = vpop.f32.mrb[11].mxu1  ;;  %v1582_v43 = vmul.f32 %v1521_v47, %v1486_v10 }
 0x2f9   : > { %v1195_v4 = vpop.f32.mrb[9].mxu0 }
 0x2fa   : > { %v2511_v6 = vpop.f32.mrb[10].mxu0 }
 0x2fb   : > { %v1231_v8 = vpack.c.bf16 %v2511_v6, %v2510_v3  ;;  %v1198_v9 = vpop.f32.mrb[11].mxu0  ;;  %v1541_v3 = vpop.permute.xlu0 %1540 }
 0x2fc   : > { %v1230_v11 = vpack.c.bf16 %v1198_v9, %v1195_v4 }
 0x2fd   : > { %v1410_v23 = vpop.f32.mrb[12].mxu1 }
 0x2fe   : > { %2540 = vmatprep.mubr.bf16.mxu0 %v1230_v11  ;;  %v3702_v24 = vpop.f32.mrb[13].mxu1  ;;  %v1488_v0 = vsub.f32 %v3745_v49, %v1410_v23  ;;  %v1546_v11 = vpop.permute.xlu1 %1545 }
 0x2ff   : > { %2541 = vmatmul.mubr.bf16.gmra.mrb[24].mxu0 %v1231_v8  ;;  %v3704_v25 = vpop.f32.mrb[14].mxu1  ;;  %v1551_v44 = vpop.permute.xlu0 %1550 }
 0x300   : > { %v2514_v13 = vpop.f32.mrb[12].mxu0  ;;  %v3706_v26 = vpop.f32.mrb[15].mxu1 }
 0x301   : > { %v1211_v14 = vpop.f32.mrb[13].mxu0 }
 0x302   : > { %v2515_v16 = vpop.f32.mrb[14].mxu0 }
 0x303   : > { %v1233_v18 = vpack.c.bf16 %v2515_v16, %v2514_v13  ;;  %v1214_v19 = vpop.f32.mrb[15].mxu0  ;;  %v1489_v16 = vsub.f32 %v3745_v49, %v3704_v25 }
 0x304   : > { %v1232_v21 = vpack.c.bf16 %v1214_v19, %v1211_v14  ;;  %v1487_v19 = vsub.f32 %v3745_v49, %v3698_v20  ;;  %v1556_v20 = vpop.permute.xlu1 %1555 }
 0x305   : > { %v3708_v27 = vpop.f32.mrb[16].mxu1  ;;  %v1585_v46 = vmul.f32 %v1536_v55, %v1489_v16 }
 0x306   : > { %2544 = vmatprep.mubr.bf16.mxu0 %v1232_v21  ;;  %v3710_v28 = vpop.f32.mrb[17].mxu1  ;;  %v1583_v54 = vmul.f32 %v1526_v48, %v1487_v19  ;;  %v1490_v55 = vsub.f32 %v3745_v49, %v3708_v27  ;;  %v1561_v27 = vpop.permute.xlu0 %1560 }
 0x307   : > { %2545 = vmatmul.mubr.bf16.gmra.mrb[28].mxu0 %v1233_v18  ;;  %v3712_v29 = vpop.f32.mrb[18].mxu1 }
 0x308   : > { %v3714_v30 = vpop.f32.mrb[19].mxu1  ;;  %v1566_v10 = vpop.permute.xlu1 %1565 }
 0x30d   : > { %v3716_v31 = vpop.f32.mrb[20].mxu1 }
 0x30e   : > { %v3718_v32 = vpop.f32.mrb[21].mxu1 }
 0x30f   : > { %v3720_v33 = vpop.f32.mrb[22].mxu1 }
 0x310   : > { %v3722_v34 = vpop.f32.mrb[23].mxu1 }
 0x315   : > { %v3724_v35 = vpop.f32.mrb[24].mxu1 }
 0x316   : > { %v3726_v36 = vpop.f32.mrb[25].mxu1 }
 0x317   : > { %v3728_v37 = vpop.f32.mrb[26].mxu1 }
 0x318   : > { %v3730_v38 = vpop.f32.mrb[27].mxu1 }
 0x31d   : > { %v3732_v39 = vpop.f32.mrb[28].mxu1 }
 0x31e   : > { %v3734_v40 = vpop.f32.mrb[29].mxu1 }
 0x31f   : > { %v3736_v41 = vpop.f32.mrb[30].mxu1 }
 0x320   : > { %v3738_v42 = vpop.f32.mrb[31].mxu1 }
 0x3c2   : > { %v2534_v58 = vpop.f32.mrb[16].mxu0 }
 0x3c3   : > { %v1685_v62 = vadd.f32 %v2534_v58, %v1580_v56  ;;  %v1676_v63 = vpop.f32.mrb[17].mxu0 }
 0x3c4   : > { %v1677_v4 = vadd.f32 %v1676_v63, %v1578_v57  ;;  %v2535_v5 = vpop.f32.mrb[18].mxu0 }
 0x3c5   : > { %v1741_v6 = vadd.f32 %v1685_v62, %v3690_v7  ;;  %v1688_v8 = vadd.f32 %v2535_v5, %v1581_v60  ;;  %v1679_v9 = vpop.f32.mrb[19].mxu0  ;;  %v1493_v5 = vsub.f32 %v3745_v49, %v3720_v33 }
 0x3c6   : > { %v1739_v13 = vadd.f32 %v1677_v4, %v3684_v61  ;;  %v1680_v14 = vadd.f32 %v1679_v9, %v1579_v1  ;;  %v1584_v61 = vmul.f32 %v1531_v52, %v1488_v0  ;;  %v1492_v52 = vsub.f32 %v3745_v49, %v3716_v31 }
 0x3c7   : > { %v1764_v18 = vadd.f32 %v3758_v59, %v1741_v6  ;;  %v1742_v7 = vadd.f32 %v1688_v8, %v3692_v12  ;;  %v1491_v0 = vsub.f32 %v3745_v49, %v3712_v29  ;;  %v1586_v9 = vmul.f32 %v1541_v3, %v1490_v55 }
 0x3c8   : > { %v1762_v15 = vadd.f32 %v3758_v59, %v1739_v13  ;;  %v1740_v21 = vadd.f32 %v1680_v14, %v3688_v2  ;;  %v1588_v8 = vmul.f32 %v1551_v44, %v1492_v52  ;;  %v1589_v16 = vmul.f32 %v1556_v20, %v1493_v5 }
 0x3c9   : > { %v1765_v23 = vadd.f32 %v3758_v59, %v1742_v7  ;;  %v1780_v50 = vmax.f32 %v1764_v18, 0.0  ;;  %v1587_v29 = vmul.f32 %v1546_v11, %v1491_v0 }
 0x3ca   : > { %v1763_v45 = vadd.f32 %v3758_v59, %v1740_v21  ;;  %v2538_v25 = vpop.f32.mrb[20].mxu0  ;;  %v1778_v56 = vmax.f32 %v1762_v15, 0.0 }
 0x3cb   : > { %v1781_v51 = vmax.f32 %v1765_v23, 0.0  ;;  %v1701_v12 = vadd.f32 %v2538_v25, %v1584_v61  ;;  %v1692_v53 = vpop.f32.mrb[21].mxu0  ;;  %v1494_v25 = vsub.f32 %v3745_v49, %v3724_v35 }
 0x3cc   : > { %v1779_v57 = vmax.f32 %v1763_v45, 0.0  ;;  %v1693_v58 = vadd.f32 %v1692_v53, %v1582_v43  ;;  %v2539_v2 = vpop.f32.mrb[22].mxu0 }
 0x3cd   : > { %v1795_v60 = vpack.c.bf16 %v1781_v51, %v1780_v50  ;;  %v1745_v47 = vadd.f32 %v1701_v12, %v3702_v24  ;;  %v1704_v62 = vadd.f32 %v2539_v2, %v1585_v46  ;;  %v1695_v63 = vpop.f32.mrb[23].mxu0  ;;  %v1571_v46 = vpop.permute.xlu0 %1570  ;;  %v1497_v12 = vsub.f32 %v3745_v49, %v3736_v41 }
 0x3ce   : > { %v1794_v1 = vpack.c.bf16 %v1779_v57, %v1778_v56  ;;  %v1743_v4 = vadd.f32 %v1693_v58, %v3696_v17  ;;  %v1696_v48 = vadd.f32 %v1695_v63, %v1583_v54  ;;  %v1576_v54 = vpop.permute.xlu1 %1575  ;;  %v1590_v57 = vmul.f32 %v1561_v27, %v1494_v25 }
 0x3cf   : > { %1807 = vst [vmem:[%s3788_s26 + $0x8] sm:$0xff] %v1795_v60  ;;  %v1768_v31 = vadd.f32 %v3758_v59, %v1745_v47  ;;  %v1746_v24 = vadd.f32 %v1704_v62, %v3706_v26  ;;  %v1593_v2 = vmul.f32 %v1576_v54, %v1497_v12 }
 0x3d0   : > { %1806 = vst [vmem:[%s3788_s26] sm:$0xff] %v1794_v1  ;;  %v1766_v17 = vadd.f32 %v3758_v59, %v1743_v4  ;;  %v1744_v6 = vadd.f32 %v1696_v48, %v3700_v22  ;;  %v1496_v22 = vsub.f32 %v3745_v49, %v3732_v39 }
 0x3d1   : > { %v1769_v33 = vadd.f32 %v3758_v59, %v1746_v24  ;;  %v1784_v18 = vmax.f32 %v1768_v31, 0.0 }
 0x3d2   : > { %v1767_v13 = vadd.f32 %v3758_v59, %v1744_v6  ;;  %v2542_v14 = vpop.f32.mrb[24].mxu0  ;;  %v1782_v15 = vmax.f32 %v1766_v17, 0.0  ;;  %v1592_v56 = vmul.f32 %v1571_v46, %v1496_v22 }
 0x3d3   : > { %v1785_v26 = vmax.f32 %v1769_v33, 0.0  ;;  %v1717_v7 = vadd.f32 %v2542_v14, %v1588_v8  ;;  %v1708_v19 = vpop.f32.mrb[25].mxu0 }
 0x3d4   : > { %v1783_v21 = vmax.f32 %v1767_v13, 0.0  ;;  %v1709_v61 = vadd.f32 %v1708_v19, %v1586_v9  ;;  %v2543_v23 = vpop.f32.mrb[26].mxu0 }
 0x3d5   : > { %v1797_v3 = vpack.c.bf16 %v1785_v26, %v1784_v18  ;;  %v1749_v43 = vadd.f32 %v1717_v7, %v3718_v32  ;;  %v1720_v44 = vadd.f32 %v2543_v23, %v1589_v16  ;;  %v1711_v45 = vpop.f32.mrb[27].mxu0  ;;  %v1495_v32 = vsub.f32 %v3745_v49, %v3728_v37 }
 0x3d6   : > { %v1796_v50 = vpack.c.bf16 %v1783_v21, %v1782_v15  ;;  %v1747_v11 = vadd.f32 %v1709_v61, %v3710_v28  ;;  %v1712_v51 = vadd.f32 %v1711_v45, %v1587_v29 }
 0x3d7   : > { %1809 = vst [vmem:[%s3788_s26 + $0x18] sm:$0xff] %v1797_v3  ;;  %v1772_v39 = vadd.f32 %v3758_v59, %v1749_v43  ;;  %v1750_v53 = vadd.f32 %v1720_v44, %v3722_v34  ;;  %v1591_v37 = vmul.f32 %v1566_v10, %v1495_v32 }
 0x3d8   : > { %1808 = vst [vmem:[%s3788_s26 + $0x10] sm:$0xff] %v1796_v50  ;;  %v1770_v35 = vadd.f32 %v3758_v59, %v1747_v11  ;;  %v1748_v20 = vadd.f32 %v1712_v51, %v3714_v30 }
 0x3d9   : > { %v1773_v28 = vadd.f32 %v3758_v59, %v1750_v53  ;;  %v1788_v52 = vmax.f32 %v1772_v39, 0.0 }
 0x3da   : > { %v1771_v41 = vadd.f32 %v3758_v59, %v1748_v20  ;;  %v2546_v58 = vpop.f32.mrb[28].mxu0  ;;  %v1786_v49 = vmax.f32 %v1770_v35, 0.0 }
 0x3db   : > { %v1789_v34 = vmax.f32 %v1773_v28, 0.0  ;;  %v1733_v60 = vadd.f32 %v2546_v58, %v1592_v56  ;;  %v1724_v47 = vpop.f32.mrb[29].mxu0 }
 0x3dc   : > { %v1787_v62 = vmax.f32 %v1771_v41, 0.0  ;;  %v1725_v63 = vadd.f32 %v1724_v47, %v1590_v57  ;;  %v2547_v55 = vpop.f32.mrb[30].mxu0 }
 0x3dd   : > { %v1799_v30 = vpack.c.bf16 %v1789_v34, %v1788_v52  ;;  %v1753_v1 = vadd.f32 %v1733_v60, %v3734_v40  ;;  %v1736_v4 = vadd.f32 %v2547_v55, %v1593_v2  ;;  %v1727_v48 = vpop.f32.mrb[31].mxu0 }
 0x3de   : > { %v1798_v5 = vpack.c.bf16 %v1787_v62, %v1786_v49  ;;  %v1751_v31 = vadd.f32 %v1725_v63, %v3726_v36  ;;  %v1728_v24 = vadd.f32 %v1727_v48, %v1591_v37 }
 0x3df   : > { %1811 = vst [vmem:[%s3788_s26 + $0x28] sm:$0xff] %v1799_v30  ;;  %v1776_v0 = vadd.f32 %v3758_v59, %v1753_v1  ;;  %v1754_v27 = vadd.f32 %v1736_v4, %v3738_v42 }
 0x3e0   : > { %1810 = vst [vmem:[%s3788_s26 + $0x20] sm:$0xff] %v1798_v5  ;;  %v1774_v17 = vadd.f32 %v3758_v59, %v1751_v31  ;;  %v1752_v6 = vadd.f32 %v1728_v24, %v3730_v38 }
 0x3e1   : > { %v1777_v40 = vadd.f32 %v3758_v59, %v1754_v27  ;;  %v1792_v33 = vmax.f32 %v1776_v0, 0.0 }
 0x3e2   : > { %v1775_v8 = vadd.f32 %v3758_v59, %v1752_v6  ;;  %v1790_v36 = vmax.f32 %v1774_v17, 0.0 }
 0x3e3   : > { %v1793_v9 = vmax.f32 %v1777_v40, 0.0 }
 0x3e4   : > { %v1791_v10 = vmax.f32 %v1775_v8, 0.0 }
 0x3e5   : > { %v1801_v13 = vpack.c.bf16 %v1793_v9, %v1792_v33 }
 0x3e6   : > { %v1800_v14 = vpack.c.bf16 %v1791_v10, %v1790_v36 }
 0x3e7   : > { %1813 = vst [vmem:[%s3788_s26 + $0x38] sm:$0xff] %v1801_v13 }
 0x3e8   : > { %1812 = vst [vmem:[%s3788_s26 + $0x30] sm:$0xff] %v1800_v14 }
 0x3e9 PF: > { %p1814_p3 = scmp.eq.s32.totalorder %s3133_s16, 3 }
 0x3ea   : > { %v3155_v16 = vmov (%p1814_p3), 0.0   ;;  %vm3156_vm0 = vmmov (%p1814_p3), 0   ;;  %v3157_v59 = vmov (%p1814_p3), 0.0|0.0   ;;  %s4040_s1 = sld [smem:[#allocation31_spill]] (%p1814_p3)  ;;  %s4041_s17 = sld [smem:[#allocation26_spill]] (%p1814_p3)  ;;  %v1962_v2 = vld [vmem:[#allocation12] sm:$0xff] (%p1814_p3) }
 0x3eb   : > { %1818 = sbr.rel (!%p1814_p3) target bundleno = 1682 (0x692), region = 116  ;;  %2548 = vmatprep.subr.bf16.mxu0 (%p1814_p3), %v3155_v16  ;;  %2564 = vmatprep.mubr.msk.bf16.mxu0 (%p1814_p3), %vm3156_vm0, %v3155_v16  ;;  %v1963_v52 = vld [vmem:[#allocation12 + $0x8] sm:$0xff] (%p1814_p3)  ;;  %v1964_v34 = vld [vmem:[#allocation12 + $0x10] sm:$0xff] (%p1814_p3)  ;;  %v1965_v47 = vld [vmem:[#allocation12 + $0x18] sm:$0xff] (%p1814_p3)  ;;  %s4042_s27 = sld [smem:[#allocation32_spill]] (%p1814_p3) }
 0x3ec   : > { %2638 = vmatprep.subr.bf16.mxu1 (%p1814_p3), %v3157_v59  ;;  %2600 = vmatprep.mubr.msk.f32.mxu1 (%p1814_p3), %vm3156_vm0, %v3155_v16  ;;  %v2663_v60 = vpack.c.bf16 (%p1814_p3), %v1963_v52, %v1962_v2  ;;  %v2666_v37 = vpack.c.bf16 (%p1814_p3), %v1965_v47, %v1964_v34  ;;  %v1966_v49 = vld [vmem:[#allocation12 + $0x20] sm:$0xff] (%p1814_p3)  ;;  %v1967_v62 = vld [vmem:[#allocation12 + $0x28] sm:$0xff] (%p1814_p3)  ;;  %v1968_v55 = vld [vmem:[#allocation12 + $0x30] sm:$0xff] (%p1814_p3)  ;;  %s4043_s6 = sld [smem:[#allocation33_spill]] (%p1814_p3) }
 0x3ed   : > { %v2669_v63 = vpack.c.bf16 (%p1814_p3), %v1967_v62, %v1966_v49  ;;  %v1969_v30 = vld [vmem:[#allocation12 + $0x38] sm:$0xff] (%p1814_p3)  ;;  %v1970_v4 = vld [vmem:[#allocation12 + $0x40] sm:$0xff] (%p1814_p3)  ;;  %v1971_v48 = vld [vmem:[#allocation12 + $0x48] sm:$0xff] (%p1814_p3) }
 0x3ee   : > { %v2672_v1 = vpack.c.bf16 (%p1814_p3), %v1969_v30, %v1968_v55  ;;  %v2675_v5 = vpack.c.bf16 (%p1814_p3), %v1971_v48, %v1970_v4  ;;  %v1972_v31 = vld [vmem:[#allocation12 + $0x50] sm:$0xff] (%p1814_p3)  ;;  %v1973_v24 = vld [vmem:[#allocation12 + $0x58] sm:$0xff] (%p1814_p3)  ;;  %v1974_v27 = vld [vmem:[#allocation12 + $0x60] sm:$0xff] (%p1814_p3) }
 0x3ef   : > { %v1819_v42 = vld [vmem:[#allocation2 + $0x40] sm:$0xff] (%p1814_p3)  ;;  %v1820_v38 = vld [vmem:[#allocation2 + $0x48] sm:$0xff] (%p1814_p3)  ;;  %v1821_v21 = vld [vmem:[#allocation2 + $0x50] sm:$0xff] (%p1814_p3)  ;;  %v2678_v0 = vpack.c.bf16 (%p1814_p3), %v1973_v24, %v1972_v31 }
 0x3f0   : > { %2549 = vmatpush3.bf16.msra.mxu0 (%p1814_p3), %v1819_v42  ;;  %v1868_v18 = vld [vmem:[%s4040_s1] sm:$0xff] (%p1814_p3)  ;;  %v1869_v26 = vld [vmem:[%s4040_s1 + $0x8] sm:$0xff] (%p1814_p3)  ;;  %v1870_v7 = vld [vmem:[%s4040_s1 + $0x10] sm:$0xff] (%p1814_p3) }
 0x3f1   : > { %2550 = vmatprep.subr.bf16.mxu0 (%p1814_p3), %v3155_v16  ;;  %v2639_v19 = vpack.c.bf16 (%p1814_p3), %v1869_v26, %v1868_v18  ;;  %v1871_v29 = vld [vmem:[%s4040_s1 + $0x18] sm:$0xff] (%p1814_p3)  ;;  %v1872_v61 = vld [vmem:[%s4040_s1 + $0x20] sm:$0xff] (%p1814_p3)  ;;  %v1873_v23 = vld [vmem:[%s4040_s1 + $0x28] sm:$0xff] (%p1814_p3) }
 0x3f2   : > { %v2642_v15 = vpack.c.bf16 %v1871_v29, %v1870_v7  ;;  %v2645_v22 = vpack.c.bf16 %v1873_v23, %v1872_v61  ;;  %v1822_v3 = vld [vmem:[#allocation2 + $0x58] sm:$0xff]  ;;  %v1874_v43 = vld [vmem:[%s4040_s1 + $0x30] sm:$0xff]  ;;  %v1823_v25 = vld [vmem:[#allocation2 + $0x60] sm:$0xff] }
 0x3f3   : > { %2640 = vmatpush3.bf16.msra.mxu1 %v2639_v19  ;;  %v1875_v44 = vld [vmem:[%s4040_s1 + $0x38] sm:$0xff]  ;;  %v1876_v46 = vld [vmem:[%s4040_s1 + $0x40] sm:$0xff]  ;;  %v1877_v50 = vld [vmem:[%s4040_s1 + $0x48] sm:$0xff] }
 0x3f4   : > { %2551 = vmatpush3.bf16.msra.mxu0 %v1820_v38  ;;  %2641 = vmatprep.subr.bf16.mxu1 %v3157_v59  ;;  %v2648_v45 = vpack.c.bf16 %v1875_v44, %v1874_v43  ;;  %v2651_v11 = vpack.c.bf16 %v1877_v50, %v1876_v46  ;;  %v1824_v51 = vld [vmem:[#allocation2 + $0x68] sm:$0xff]  ;;  %v1878_v12 = vld [vmem:[%s4040_s1 + $0x50] sm:$0xff]  ;;  %v1879_v39 = vld [vmem:[%s4040_s1 + $0x58] sm:$0xff] }
 0x3f5   : > { %2552 = vmatprep.subr.bf16.mxu0 %v3155_v16  ;;  %v2654_v53 = vpack.c.bf16 %v1879_v39, %v1878_v12  ;;  %v1825_v32 = vld [vmem:[#allocation2 + $0x70] sm:$0xff]  ;;  %v1880_v54 = vld [vmem:[%s4040_s1 + $0x60] sm:$0xff]  ;;  %v1881_v35 = vld [vmem:[%s4040_s1 + $0x68] sm:$0xff] }
 0x3f6   : > { %v2657_v20 = vpack.c.bf16 %v1881_v35, %v1880_v54  ;;  %v1826_v56 = vld [vmem:[#allocation2 + $0x78] sm:$0xff]  ;;  %v1882_v28 = vld [vmem:[%s4040_s1 + $0x70] sm:$0xff]  ;;  %v1827_v41 = vld [vmem:[%s4041_s17] sm:$0xf] }
 0x3f7   : > { %2643 = vmatpush3.bf16.msra.mxu1 %v2642_v15  ;;  %v1883_v57 = vld [vmem:[%s4040_s1 + $0x78] sm:$0xff]  ;;  %v1975_v17 = vld [vmem:[#allocation12 + $0x68] sm:$0xff]  ;;  %v1976_v36 = vld [vmem:[#allocation12 + $0x70] sm:$0xff] }
 0x3f8   : > { %2553 = vmatpush3.bf16.msra.mxu0 %v1821_v21  ;;  %2644 = vmatprep.subr.bf16.mxu1 %v3157_v59  ;;  %v2660_v58 = vpack.c.bf16 %v1883_v57, %v1882_v28  ;;  %v2681_v6 = vpack.c.bf16 %v1975_v17, %v1974_v27  ;;  %v1977_v10 = vld [vmem:[#allocation12 + $0x78] sm:$0xff]  ;;  %v2347_v14 = vld [vmem:[%s4042_s27] ss:$0 sm:$0xff] }
 0x3f9   : > { %2554 = vmatprep.subr.bf16.mxu0 %v3155_v16  ;;  %v2684_v13 = vpack.c.bf16 %v1977_v10, %v1976_v36 }
 0x3fb   : > { %2646 = vmatpush3.bf16.msra.mxu1 %v2645_v22 }
 0x3fc   : > { %2555 = vmatpush3.bf16.msra.mxu0 %v1822_v3  ;;  %2647 = vmatprep.subr.bf16.mxu1 %v3157_v59 }
 0x3fd   : > { %2556 = vmatprep.subr.bf16.mxu0 %v3155_v16 }
 0x3ff   : > { %2649 = vmatpush3.bf16.msra.mxu1 %v2648_v45 }
 0x400   : > { %2557 = vmatpush3.bf16.msra.mxu0 %v1823_v25  ;;  %2650 = vmatprep.subr.bf16.mxu1 %v3157_v59 }
 0x401   : > { %2558 = vmatprep.subr.bf16.mxu0 %v3155_v16 }
 0x403   : > { %2652 = vmatpush3.bf16.msra.mxu1 %v2651_v11 }
 0x404   : > { %2559 = vmatpush3.bf16.msra.mxu0 %v1824_v51  ;;  %2653 = vmatprep.subr.bf16.mxu1 %v3157_v59 }
 0x405   : > { %2560 = vmatprep.subr.bf16.mxu0 %v3155_v16 }
 0x407   : > { %2655 = vmatpush3.bf16.msra.mxu1 %v2654_v53 }
 0x408   : > { %2561 = vmatpush3.bf16.msra.mxu0 %v1825_v32  ;;  %2656 = vmatprep.subr.bf16.mxu1 %v3157_v59 }
 0x409   : > { %2562 = vmatprep.subr.bf16.mxu0 %v3155_v16 }
 0x40b   : > { %2658 = vmatpush3.bf16.msra.mxu1 %v2657_v20 }
 0x40c   : > { %2563 = vmatpush3.bf16.msra.mxu0 %v1826_v56  ;;  %2659 = vmatprep.subr.bf16.mxu1 %v3157_v59 }
 0x40d   : > { %2662 = vmatprep.subr.bf16.mxu0 %v3157_v59 }
 0x40f   : > { %2565 = vmatmul.mubr.bf16.vlgmr.msra.gmra.mrb[0].mxu0 %v1827_v41  ;;  %2661 = vmatpush3.bf16.msra.mxu1 %v2660_v58 }
 0x410   : > { %2635 = vmatprep.mubr.msk.f32.mxu0 %vm3156_vm0, %v3155_v16  ;;  %2664 = vmatpush3.bf16.msra.mxu0 %v2663_v60 }
 0x411   : > { %2665 = vmatprep.subr.bf16.mxu0 %v3157_v59 }
 0x414   : > { %2667 = vmatpush3.bf16.msra.mxu0 %v2666_v37 }
 0x415   : > { %2668 = vmatprep.subr.bf16.mxu0 %v3157_v59 }
 0x418   : > { %2670 = vmatpush3.bf16.msra.mxu0 %v2669_v63 }
 0x419   : > { %2671 = vmatprep.subr.bf16.mxu0 %v3157_v59 }
 0x41c   : > { %2673 = vmatpush3.bf16.msra.mxu0 %v2672_v1 }
 0x41d   : > { %2674 = vmatprep.subr.bf16.mxu0 %v3157_v59 }
 0x420   : > { %2676 = vmatpush3.bf16.msra.mxu0 %v2675_v5 }
 0x421   : > { %2677 = vmatprep.subr.bf16.mxu0 %v3157_v59 }
 0x424   : > { %2679 = vmatpush3.bf16.msra.mxu0 %v2678_v0 }
 0x425   : > { %2680 = vmatprep.subr.bf16.mxu0 %v3157_v59 }
 0x428   : > { %2682 = vmatpush3.bf16.msra.mxu0 %v2681_v6 }
 0x429   : > { %2683 = vmatprep.subr.bf16.mxu0 %v3157_v59  ;;  %v2348_v59 = vld [vmem:[%s4043_s6] ss:$0 sm:$0xff] }
 0x42c   : > { %2685 = vmatpush3.bf16.msra.mxu0 %v2684_v13 }
 0x4e2   : > { %v1862_v40 = vpop.f32.mrb[0].mxu0 }
 0x4e3   : > { %v2566_v8 = vpop.f32.mrb[1].mxu0  ;;  %2601 = vmatmul.mubr.f32.vlgmr.msra.gmra.mrb[0].mxu1 %v1862_v40 }
 0x4e4   : > { %v1865_v33 = vpop.f32.mrb[2].mxu0 }
 0x4e5   : > { %v2567_v9 = vpop.f32.mrb[3].mxu0 }
 0x5b6   : > { %v1957_v42 = vpop.f32.mrb[0].mxu1 }
 0x5b7   : > { %v1958_v16 = vadd.f32 %v2347_v14, %v1957_v42  ;;  %v2602_v38 = vpop.f32.mrb[1].mxu1 }
 0x5b9   : > { %v1961_v18 = vmax.f32 %v1958_v16, 0.0 }
 0x5bb   : > { %2636 = vmatmul.mubr.f32.vlgmr.msra.gmra.mrb[4].mxu0 %v1961_v18 }
 0x68e   : > { %v2051_v26 = vpop.f32.mrb[4].mxu0 }
 0x68f   : > { %v2052_v7 = vadd.f32 %v2348_v59, %v2051_v26  ;;  %v2637_v19 = vpop.f32.mrb[5].mxu0 }
 0x691   : > { %2055 = vst [vmem:[#allocation14] sm:$0xff] %v2052_v7 }
 0x692 PF: > { %p2755_p5 = scmp.eq.s32.totalorder %s3263_s19, 3  ;;  %s3158_s11 = smov [#allocation14]  }
 0x693   : > { %s2063_s22 = sshll.u32 %s3158_s11, 4  ;;  %s2064_s22 = int_to_ptr.vmem [resolvable:$true] %s2063_s22 }
 0x694   : > { %s3049_s26 = scalar_lea.vmem %s2064_s22, 128  ;;  %p3056_p8 = scmp.lt.s32.totalorder %s2064_s22, %s2064_s22 }
 0x695   : > { %p3050_p7 = scmp.ne.s32.totalorder %s2064_s22, %s3049_s26  ;;  %p3057_p0 = scmp.lt.s32.totalorder %s3049_s26, %s3049_s26 }
 0x697   : > { %p3051_p10 = pnand %p3050_p7, %p2755_p5  ;;  %p3058_p11 = por %p3057_p0, %p3056_p8 }
 0x699   : > { %p3052_p9 = pneg %p3051_p10 }
 0x69b   : > { %p3059_p1 = pnand %p3058_p11, %p3052_p9 }
 0x69d   : > { %3062 = shalt.err (!%p3059_p1)
}
 0x69e   : > { %s4044_s16 = sld [smem:[#allocation34_spill]] }
 0x6a4   : > { %s4045_s3 = smov %s4044_s16  ;;  %s3063_s20 = scalar_lea.hbm %s4044_s16, 128 }
 0x6a5   : > { %p3064_p13 = scmp.ne.s32.totalorder %s4045_s3, %s3063_s20  ;;  %p3069_p6 = scmp.lt.u32.totalorder %s3063_s20, %s4045_s3 }
 0x6a7   : > { %p3065_p2 = pnand %p3064_p13, %p2755_p5 }
 0x6a9   : > { %p3066_p12 = pneg %p3065_p2 }
 0x6ab   : > { %p3071_p4 = pnand %p3069_p6, %p3066_p12 }
 0x6ad   : > { %3074 = shalt.err (!%p3071_p4)
}
 0x6ae   : > { %2723 = dma.vmem_to_hbm [thread:$0]  (%p2755_p5), %s2064_s22, 128, %s4045_s3, [#allocation5]  }
 0x6af   : > { %3116 = dma.done.wait (%p2755_p5), [#allocation5], 128  }
 0x6b0   : > { %3118 = vsyncadd (%p2755_p5), [#allocation5], 4294967168 }
 0x6b1 PF: > { %s33_s18 = sadd.s32 1, %s3141_s18   ;;  %s4046_s9 = sld [smem:[#allocation20_spill]] }
 0x6b2   : > { %p30_p3 = scmp.ge.s32.totalorder %s33_s18, 6   ;;  %s4047_s15 = sld [smem:[#allocation23_spill]] }
 0x6b3   : > { %s4048_s16 = sld [smem:[#allocation21_spill]]  ;;  %s4049_s17 = sld [smem:[#allocation22_spill]] }
 0x6b4   : > { %s4050_s29 = smov %s3125_s30  ;;  %32 = sbr.rel (!%p30_p3) target bundleno = 21 (0x15), region = 179 }
 0x6b7   : > { %s4051_s30 = smov %s4046_s9 }
 0x6bb   :  { %2076 = vsyncpa [#allocation4], 1 }
 0x6bc   :  { %2078 = vsyncpa [#allocation4 + $0x1], 1 }
 0x6bd   :  { %2079 = vsyncpa [#allocation7], 1 }
 0x6be   :  { %2080 = vsyncpa [#allocation10], 1 }
 0x6bf   :  { %2082 = vsyncpa [#allocation10 + $0x1], 1 }
 0x6c0   :  { %2083 = vsyncpa [#allocation13], 1 }
 0x6c1   :  { %2084 = vsyncpa [#allocation5], 1 }
 0x6c2   :  { %2086 = vsyncpa [#allocation5 + $0x1], 1 }

</bundles_post_ra>
